<compile_context>
chip_gen: v6e
topology: v6e:2x2x1
jax: 0.10.0
libtpu: 0.0.40
codegen_flags: <defaults>
</compile_context>

<pallas_src>
import functools

import jax
import jax.numpy as jnp
from jax.experimental import pallas as pl
from jax.experimental.pallas import tpu as pltpu


# --------------------------------------------------------------------------
# Kernels
# --------------------------------------------------------------------------
def _ffn_resident_kernel(x_ref, w1_ref, b1_ref, wg_ref, bg_ref, wv_ref, bv_ref,
                         w2_ref, b2_ref, o_ref):
    """All weights resident in VMEM; one token tile per grid step."""
    # fc1: [tm, d_model] @ [d_model, d_ff] (bf16 MXU, f32 accumulate) + b1
    h32 = jnp.dot(x_ref[...], w1_ref[...],
                  preferred_element_type=jnp.float32) + b1_ref[...]
    h = h32.astype(wg_ref.dtype)

    # SwiGLU projections
    g = jnp.dot(h, wg_ref[...], preferred_element_type=jnp.float32) + bg_ref[...]
    v = jnp.dot(h, wv_ref[...], preferred_element_type=jnp.float32) + bv_ref[...]
    gated = (g * jax.nn.sigmoid(g)) * v          # f32 on VPU/EUP

    # fc2
    out = jnp.dot(gated.astype(w2_ref.dtype), w2_ref[...],
                  preferred_element_type=jnp.float32) + b2_ref[...]
    o_ref[...] = out.astype(o_ref.dtype)


def _ffn_chunked_kernel(x_ref, w1_ref, b1_ref, wg_ref, bg_ref, wv_ref, bv_ref,
                        w2_ref, b2_ref, o_ref, h_scratch, acc_ref):
    """d_ff-chunked plan: grid = (token tiles, d_ff chunks).

    W1 / b1 / b2 and the fc1 activation h are resident; Wg/Wv (column chunks)
    and W2 (row chunks) stream through VMEM; fc2 partials accumulate in an f32
    scratch and are written out on the last chunk.
    """
    j = pl.program_id(1)

    @pl.when(j == 0)
    def _():
        h32 = jnp.dot(x_ref[...], w1_ref[...],
                      preferred_element_type=jnp.float32) + b1_ref[...]
        h_scratch[...] = h32.astype(h_scratch.dtype)
        acc_ref[...] = jnp.zeros_like(acc_ref)

    h = h_scratch[...]
    g = jnp.dot(h, wg_ref[...], preferred_element_type=jnp.float32) + bg_ref[...]
    v = jnp.dot(h, wv_ref[...], preferred_element_type=jnp.float32) + bv_ref[...]
    gated = (g * jax.nn.sigmoid(g)) * v
    acc_ref[...] += jnp.dot(gated.astype(w2_ref.dtype), w2_ref[...],
                            preferred_element_type=jnp.float32)

    @pl.when(j == pl.num_programs(1) - 1)
    def _():
        o_ref[...] = (acc_ref[...] + b2_ref[...]).astype(o_ref.dtype)


# --------------------------------------------------------------------------
# Helpers
# --------------------------------------------------------------------------
def _vmem_capacity_bytes(default=64 * 1024 * 1024):
    """Per-core VMEM capacity; conservative fallback if query unavailable."""
    try:
        cap = getattr(pltpu.get_tpu_info(), "vmem_capacity_bytes", None)
        if cap:
            return int(cap)
    except Exception:
        pass
    return default


def _resident_footprint(tm, d_model, d_ff, wbytes, xbytes, obytes):
    weights = (2 * d_model * d_ff + 2 * d_ff * d_ff) * wbytes
    biases = (3 * d_ff + d_model) * 4
    io = 2 * tm * d_model * xbytes + 2 * tm * d_model * obytes   # double-buffered
    interm = tm * (3 * d_ff + d_model) * 4 + tm * d_ff * wbytes  # h/g/v/out f32 + h bf16
    return weights + biases + io + interm


def _chunked_footprint(tm, d_model, d_ff, c, wbytes, xbytes, obytes):
    resident = d_model * d_ff * wbytes + (d_ff + d_model) * 4          # W1, b1, b2
    tiles = 2 * ((2 * d_ff * c + c * d_model) * wbytes + 2 * c * 4)    # dbl-buffered chunks
    io = 2 * tm * d_model * xbytes + 2 * tm * d_model * obytes
    scratch = tm * d_ff * wbytes + tm * d_model * 4                    # h, acc
    interm = 3 * tm * c * 4                                            # g, v, gated
    return resident + tiles + io + scratch + interm


def prepare_params(params, compute_dtype=jnp.bfloat16):
    """One-time preprocessing: cast weights to the MXU dtype, reshape biases.

    Call ONCE (outside jit / the serving loop) and pass the result to
    position_wise_feed_forward -- this removes per-call weight cast traffic.
    """
    w1, b1, wg, bg, wv, bv, w2, b2 = params
    d_model, d_ff = w1.shape
    assert d_ff == d_model, (
        "reference module applies SwiGLU(d_model) to fc1's d_ff output; "
        "this requires d_ff == d_model")
    assert wg.shape == (d_ff, d_ff) and wv.shape == (d_ff, d_ff)
    assert w2.shape == (d_ff, d_model)
    f32 = jnp.float32
    return (w1.astype(compute_dtype), b1.reshape(1, d_ff).astype(f32),
            wg.astype(compute_dtype), bg.reshape(1, d_ff).astype(f32),
            wv.astype(compute_dtype), bv.reshape(1, d_ff).astype(f32),
            w2.astype(compute_dtype), b2.reshape(1, d_model).astype(f32))


# --------------------------------------------------------------------------
# Wrapper
# --------------------------------------------------------------------------
def position_wise_feed_forward(x, prepared, *, tm=256, dff_chunk=None):
    """x: [B, S, d_model] -> [B, S, d_model].  `prepared` from prepare_params()."""
    w1c, b1r, wgc, bgr, wvc, bvr, w2c, b2r = prepared
    d_model, d_ff = w1c.shape
    B, S, dmx = x.shape
    assert dmx == d_model
    T = B * S
    compute_dtype = w1c.dtype

    tm = min(tm, T)
    assert T % tm == 0, "token count must be divisible by the token tile"
    assert tm == T or tm % 8 == 0, "token tile must be a multiple of 8"
    # Ensure >= 2 grid steps on the parallel token axis so v7x's 2 TCs both work.
    if T // tm < 2 and tm % 16 == 0:
        tm //= 2

    x2d = x.reshape(T, d_model).astype(compute_dtype)

    wbytes = jnp.dtype(compute_dtype).itemsize
    xbytes = wbytes
    obytes = jnp.dtype(x.dtype).itemsize

    cap = _vmem_capacity_bytes()
    budget = int(0.80 * cap)

    resident_fp = _resident_footprint(tm, d_model, d_ff, wbytes, xbytes, obytes)
    use_chunked = (dff_chunk is not None and dff_chunk < d_ff) or resident_fp > budget

    resident = pl.BlockSpec(memory_space=pltpu.MemorySpace.VMEM)

    # Cost estimate (hint for the XLA scheduler around the custom call).
    flops = 2 * T * (d_model * d_ff + 2 * d_ff * d_ff + d_ff * d_model)
    bytes_accessed = (x2d.size * xbytes + T * d_model * obytes
                      + (w1c.size + wgc.size + wvc.size + w2c.size) * wbytes
                      + (b1r.size + bgr.size + bvr.size + b2r.size) * 4)
    cost = pl.CostEstimate(flops=flops, transcendentals=T * d_ff,
                           bytes_accessed=int(bytes_accessed))

    if not use_chunked:
        fp = resident_fp
        grid_spec = pltpu.PrefetchScalarGridSpec(
            num_scalar_prefetch=0,
            grid=(T // tm,),
            in_specs=[
                pl.BlockSpec((tm, d_model), lambda i: (i, 0)),  # x token tile
                resident, resident,                             # W1, b1
                resident, resident,                             # Wg, bg
                resident, resident,                             # Wv, bv
                resident, resident,                             # W2, b2
            ],
            out_specs=pl.BlockSpec((tm, d_model), lambda i: (i, 0)),
        )
        kernel = _ffn_resident_kernel
        dims = ("parallel",)
    else:
        # Pick a d_ff chunk (multiple of 128 dividing d_ff) that fits the budget.
        c = dff_chunk if dff_chunk is not None else d_ff
        if dff_chunk is None:
            while (c > 128 and c % 256 == 0 and
                   _chunked_footprint(tm, d_model, d_ff, c, wbytes, xbytes, obytes) > budget):
                c //= 2
        assert d_ff % c == 0 and (c % 128 == 0 or c == d_ff), \
            "d_ff chunk must divide d_ff and be a multiple of 128"
        fp = _chunked_footprint(tm, d_model, d_ff, c, wbytes, xbytes, obytes)
        grid_spec = pltpu.PrefetchScalarGridSpec(
            num_scalar_prefetch=0,
            grid=(T // tm, d_ff // c),
            in_specs=[
                pl.BlockSpec((tm, d_model), lambda i, j: (i, 0)),  # x token tile
                resident, resident,                                # W1, b1 (resident)
                pl.BlockSpec((d_ff, c), lambda i, j: (0, j)),      # Wg column chunk
                pl.BlockSpec((1, c), lambda i, j: (0, j)),         # bg chunk
                pl.BlockSpec((d_ff, c), lambda i, j: (0, j)),      # Wv column chunk
                pl.BlockSpec((1, c), lambda i, j: (0, j)),         # bv chunk
                pl.BlockSpec((c, d_model), lambda i, j: (j, 0)),   # W2 row chunk
                resident,                                          # b2 (resident)
            ],
            out_specs=pl.BlockSpec((tm, d_model), lambda i, j: (i, 0)),
            scratch_shapes=[pltpu.VMEM((tm, d_ff), compute_dtype),   # h
                            pltpu.VMEM((tm, d_model), jnp.float32)],  # fc2 accumulator
        )
        kernel = _ffn_chunked_kernel
        dims = ("parallel", "arbitrary")

    vmem_limit = int(min(0.92 * cap, max(1.3 * fp, 32 * 1024 * 1024)))

    out2d = pl.pallas_call(
        kernel,
        out_shape=jax.ShapeDtypeStruct((T, d_model), x.dtype),
        grid_spec=grid_spec,
        compiler_params=pltpu.CompilerParams(
            dimension_semantics=dims, vmem_limit_bytes=vmem_limit),
        cost_estimate=cost,
    )(x2d, w1c, b1r, wgc, bgr, wvc, bvr, w2c, b2r)

    return out2d.reshape(B, S, d_model)


# --------------------------------------------------------------------------
# Params / references
# --------------------------------------------------------------------------
def init_params(key, d_model, d_ff, dtype=jnp.float32):
    """Deterministic init (torch-Linear-style uniform(-1/sqrt(fan_in), +))."""
    def linear(k, fan_in, fan_out):
        kw, kb = jax.random.split(k)
        bound = 1.0 / jnp.sqrt(fan_in)
        w = jax.random.uniform(kw, (fan_in, fan_out), dtype, -bound, bound)
        b = jax.random.uniform(kb, (fan_out,), dtype, -bound, bound)
        return w, b

    k1, k2, k3, k4 = jax.random.split(key, 4)
    w1, b1 = linear(k1, d_model, d_ff)   # fc1
    wg, bg = linear(k2, d_ff, d_ff)      # SwiGLU gate proj (d_ff == d_model)
    wv, bv = linear(k3, d_ff, d_ff)      # SwiGLU value proj
    w2, b2 = linear(k4, d_ff, d_model)   # fc2
    return (w1, b1, wg, bg, wv, bv, w2, b2)


def reference(x, params):
    """Pure-f32 reference matching the PyTorch module."""
    w1, b1, wg, bg, wv, bv, w2, b2 = params
    h = x @ w1 + b1
    g = h @ wg + bg
    v = h @ wv + bv
    return (jax.nn.silu(g) * v) @ w2 + b2


def reference_mixed(x, params, compute_dtype=jnp.bfloat16):
    """Reference at the kernel's precision (bf16 MXU operands, f32 accumulate)."""
    w1, b1, wg, bg, wv, bv, w2, b2 = params
    cd, f32 = compute_dtype, jnp.float32
    h = jnp.dot(x.astype(cd), w1.astype(cd), preferred_element_type=f32) + b1
    g = jnp.dot(h.astype(cd), wg.astype(cd), preferred_element_type=f32) + bg
    v = jnp.dot(h.astype(cd), wv.astype(cd), preferred_element_type=f32) + bv
    gated = (g * jax.nn.sigmoid(g)) * v
    return jnp.dot(gated.astype(cd), w2.astype(cd), preferred_element_type=f32) + b2


if __name__ == "__main__":
    # d_ff == d_model is required by the reference module (SwiGLU(d_model) is
    # applied to fc1's d_ff-dim output). Small but MXU-friendly demo shapes.
    B, S, d_model = 2, 256, 256
    d_ff = d_model

    key = jax.random.PRNGKey(0)
    kx, kp = jax.random.split(key)
    x = jax.random.normal(kx, (B, S, d_model), jnp.float32)
    raw_params = init_params(kp, d_model, d_ff)

    # One-time weight preparation (outside jit -> no per-call cast traffic).
    prepared = prepare_params(raw_params)

    # Fast path: resident weights, 1-D parallel token grid.
    fn = jax.jit(functools.partial(position_wise_feed_forward, tm=256))
    out = jax.block_until_ready(fn(x, prepared))

    # v7x-style d_ff-chunked path, force-exercised at small scale.
    fn_chunked = jax.jit(functools.partial(position_wise_feed_forward,
                                           tm=128, dff_chunk=128))
    out_chunked = jax.block_until_ready(fn_chunked(x, prepared))

    assert out.shape == (B, S, d_model) and out.dtype == x.dtype
    assert out_chunked.shape == (B, S, d_model) and out_chunked.dtype == x.dtype

    # Paths agree with each other (only f32 accumulation-order differences).
    assert jnp.allclose(out, out_chunked, atol=1e-3, rtol=1e-3), \
        "resident vs chunked path mismatch"

    # Tight check against a reference computed at the kernel's precision
    # (bf16 operands, f32 accumulation), plus a loose sanity check vs pure f32.
    ref_mp = reference_mixed(x, raw_params)
    ref_f32 = reference(x, raw_params)
    for o in (out, out_chunked):
        assert jnp.allclose(o, ref_mp, atol=2e-2, rtol=2e-2), \
            "mismatch vs mixed-precision reference"
        assert float(jnp.max(jnp.abs(o - ref_f32))) < 1e-1, \
            "mismatch vs f32 reference"
    print("KERNEL_OK")
</pallas_src>

<mosaic_0001>
module attributes {stable_mosaic.version = 11 : i64} {
  func.func @_ffn_resident_kernel(%arg0: i32, %arg1: memref<256x256xbf16, #tpu.memory_space<vmem>>, %arg2: memref<256x256xbf16, #tpu.memory_space<vmem>>, %arg3: memref<1x256xf32, #tpu.memory_space<vmem>>, %arg4: memref<256x256xbf16, #tpu.memory_space<vmem>>, %arg5: memref<1x256xf32, #tpu.memory_space<vmem>>, %arg6: memref<256x256xbf16, #tpu.memory_space<vmem>>, %arg7: memref<1x256xf32, #tpu.memory_space<vmem>>, %arg8: memref<256x256xbf16, #tpu.memory_space<vmem>>, %arg9: memref<1x256xf32, #tpu.memory_space<vmem>>, %arg10: memref<256x256xf32, #tpu.memory_space<vmem>>) attributes {dimension_semantics = [#tpu.dimension_semantics<parallel>], iteration_bounds = array<i64: 2>, scalar_prefetch = 0 : i64, scratch_operands = 0 : i64, tpu.core_type = #tpu.core_type<tc>, window_params = [{transform_indices = @transform_0, window_bounds = array<i64: 256, 256>}, {pipeline_mode = #tpu.pipeline_mode<synchronous>, transform_indices = @transform_1, window_bounds = array<i64: 256, 256>}, {pipeline_mode = #tpu.pipeline_mode<synchronous>, transform_indices = @transform_2, window_bounds = array<i64: 1, 256>}, {pipeline_mode = #tpu.pipeline_mode<synchronous>, transform_indices = @transform_3, window_bounds = array<i64: 256, 256>}, {pipeline_mode = #tpu.pipeline_mode<synchronous>, transform_indices = @transform_4, window_bounds = array<i64: 1, 256>}, {pipeline_mode = #tpu.pipeline_mode<synchronous>, transform_indices = @transform_5, window_bounds = array<i64: 256, 256>}, {pipeline_mode = #tpu.pipeline_mode<synchronous>, transform_indices = @transform_6, window_bounds = array<i64: 1, 256>}, {pipeline_mode = #tpu.pipeline_mode<synchronous>, transform_indices = @transform_7, window_bounds = array<i64: 256, 256>}, {pipeline_mode = #tpu.pipeline_mode<synchronous>, transform_indices = @transform_8, window_bounds = array<i64: 1, 256>}, {transform_indices = @transform_9, window_bounds = array<i64: 256, 256>}]} {
    %c0 = arith.constant 0 : index
    %c0_0 = arith.constant 0 : index
    %0 = vector.load %arg1[%c0, %c0_0] : memref<256x256xbf16, #tpu.memory_space<vmem>>, vector<256x256xbf16>
    %c0_1 = arith.constant 0 : index
    %c0_2 = arith.constant 0 : index
    %1 = vector.load %arg2[%c0_1, %c0_2] : memref<256x256xbf16, #tpu.memory_space<vmem>>, vector<256x256xbf16>
    %cst = arith.constant dense<0.000000e+00> : vector<256x256xf32>
    %2 = tpu.matmul %0, %1, %cst {dimension_numbers = #tpu.dot_dimension_numbers<[1], [0], [0], [1], [0, 0, 1, 1], [], []>} : vector<256x256xbf16>, vector<256x256xbf16>, vector<256x256xf32> -> vector<256x256xf32>
    %c0_3 = arith.constant 0 : index
    %c0_4 = arith.constant 0 : index
    %3 = vector.load %arg3[%c0_3, %c0_4] : memref<1x256xf32, #tpu.memory_space<vmem>>, vector<1x256xf32>
    %4 = vector.broadcast %3 : vector<1x256xf32> to vector<256x256xf32>
    %5 = arith.addf %2, %4 : vector<256x256xf32>
    %6 = arith.truncf %5 : vector<256x256xf32> to vector<256x256xbf16>
    %c0_5 = arith.constant 0 : index
    %c0_6 = arith.constant 0 : index
    %7 = vector.load %arg4[%c0_5, %c0_6] : memref<256x256xbf16, #tpu.memory_space<vmem>>, vector<256x256xbf16>
    %cst_7 = arith.constant dense<0.000000e+00> : vector<256x256xf32>
    %8 = tpu.matmul %6, %7, %cst_7 {dimension_numbers = #tpu.dot_dimension_numbers<[1], [0], [0], [1], [0, 0, 1, 1], [], []>} : vector<256x256xbf16>, vector<256x256xbf16>, vector<256x256xf32> -> vector<256x256xf32>
    %c0_8 = arith.constant 0 : index
    %c0_9 = arith.constant 0 : index
    %9 = vector.load %arg5[%c0_8, %c0_9] : memref<1x256xf32, #tpu.memory_space<vmem>>, vector<1x256xf32>
    %10 = vector.broadcast %9 : vector<1x256xf32> to vector<256x256xf32>
    %11 = arith.addf %8, %10 : vector<256x256xf32>
    %c0_10 = arith.constant 0 : index
    %c0_11 = arith.constant 0 : index
    %12 = vector.load %arg6[%c0_10, %c0_11] : memref<256x256xbf16, #tpu.memory_space<vmem>>, vector<256x256xbf16>
    %cst_12 = arith.constant dense<0.000000e+00> : vector<256x256xf32>
    %13 = tpu.matmul %6, %12, %cst_12 {dimension_numbers = #tpu.dot_dimension_numbers<[1], [0], [0], [1], [0, 0, 1, 1], [], []>} : vector<256x256xbf16>, vector<256x256xbf16>, vector<256x256xf32> -> vector<256x256xf32>
    %c0_13 = arith.constant 0 : index
    %c0_14 = arith.constant 0 : index
    %14 = vector.load %arg7[%c0_13, %c0_14] : memref<1x256xf32, #tpu.memory_space<vmem>>, vector<1x256xf32>
    %15 = vector.broadcast %14 : vector<1x256xf32> to vector<256x256xf32>
    %16 = arith.addf %13, %15 : vector<256x256xf32>
    %17 = arith.negf %11 : vector<256x256xf32>
    %18 = math.exp %17 : vector<256x256xf32>
    %cst_15 = arith.constant 1.000000e+00 : f32
    %19 = vector.broadcast %cst_15 : f32 to vector<256x256xf32>
    %20 = arith.addf %19, %18 : vector<256x256xf32>
    %21 = arith.divf %19, %20 : vector<256x256xf32>
    %22 = arith.mulf %11, %21 : vector<256x256xf32>
    %23 = arith.mulf %22, %16 : vector<256x256xf32>
    %24 = arith.truncf %23 : vector<256x256xf32> to vector<256x256xbf16>
    %c0_16 = arith.constant 0 : index
    %c0_17 = arith.constant 0 : index
    %25 = vector.load %arg8[%c0_16, %c0_17] : memref<256x256xbf16, #tpu.memory_space<vmem>>, vector<256x256xbf16>
    %cst_18 = arith.constant dense<0.000000e+00> : vector<256x256xf32>
    %26 = tpu.matmul %24, %25, %cst_18 {dimension_numbers = #tpu.dot_dimension_numbers<[1], [0], [0], [1], [0, 0, 1, 1], [], []>} : vector<256x256xbf16>, vector<256x256xbf16>, vector<256x256xf32> -> vector<256x256xf32>
    %c0_19 = arith.constant 0 : index
    %c0_20 = arith.constant 0 : index
    %27 = vector.load %arg9[%c0_19, %c0_20] : memref<1x256xf32, #tpu.memory_space<vmem>>, vector<1x256xf32>
    %28 = vector.broadcast %27 : vector<1x256xf32> to vector<256x256xf32>
    %29 = arith.addf %26, %28 : vector<256x256xf32>
    %c0_21 = arith.constant 0 : index
    %c0_22 = arith.constant 0 : index
    %30 = vector.load %arg10[%c0_21, %c0_22] : memref<256x256xf32, #tpu.memory_space<vmem>>, vector<256x256xf32>
    tpu.vector_store %arg10[%c0_21, %c0_22], %29 {strides = array<i32>} : memref<256x256xf32, #tpu.memory_space<vmem>>, vector<256x256xf32>,
    return
  }
  func.func @transform_0(%arg0: i32) -> (i32, i32) {
    %c0_i32 = arith.constant 0 : i32
    %c0_i32_0 = arith.constant 0 : i32
    return %arg0, %c0_i32 : i32, i32
  }
  func.func @transform_1(%arg0: i32) -> (i32, i32) {
    %c0_i32 = arith.constant 0 : i32
    %c0_i32_0 = arith.constant 0 : i32
    %c0_i32_1 = arith.constant 0 : i32
    return %c0_i32, %c0_i32_0 : i32, i32
  }
  func.func @transform_2(%arg0: i32) -> (i32, i32) {
    %c0_i32 = arith.constant 0 : i32
    %c0_i32_0 = arith.constant 0 : i32
    %c0_i32_1 = arith.constant 0 : i32
    return %c0_i32, %c0_i32_0 : i32, i32
  }
  func.func @transform_3(%arg0: i32) -> (i32, i32) {
    %c0_i32 = arith.constant 0 : i32
    %c0_i32_0 = arith.constant 0 : i32
    %c0_i32_1 = arith.constant 0 : i32
    return %c0_i32, %c0_i32_0 : i32, i32
  }
  func.func @transform_4(%arg0: i32) -> (i32, i32) {
    %c0_i32 = arith.constant 0 : i32
    %c0_i32_0 = arith.constant 0 : i32
    %c0_i32_1 = arith.constant 0 : i32
    return %c0_i32, %c0_i32_0 : i32, i32
  }
  func.func @transform_5(%arg0: i32) -> (i32, i32) {
    %c0_i32 = arith.constant 0 : i32
    %c0_i32_0 = arith.constant 0 : i32
    %c0_i32_1 = arith.constant 0 : i32
    return %c0_i32, %c0_i32_0 : i32, i32
  }
  func.func @transform_6(%arg0: i32) -> (i32, i32) {
    %c0_i32 = arith.constant 0 : i32
    %c0_i32_0 = arith.constant 0 : i32
    %c0_i32_1 = arith.constant 0 : i32
    return %c0_i32, %c0_i32_0 : i32, i32
  }
  func.func @transform_7(%arg0: i32) -> (i32, i32) {
    %c0_i32 = arith.constant 0 : i32
    %c0_i32_0 = arith.constant 0 : i32
    %c0_i32_1 = arith.constant 0 : i32
    return %c0_i32, %c0_i32_0 : i32, i32
  }
  func.func @transform_8(%arg0: i32) -> (i32, i32) {
    %c0_i32 = arith.constant 0 : i32
    %c0_i32_0 = arith.constant 0 : i32
    %c0_i32_1 = arith.constant 0 : i32
    return %c0_i32, %c0_i32_0 : i32, i32
  }
  func.func @transform_9(%arg0: i32) -> (i32, i32) {
    %c0_i32 = arith.constant 0 : i32
    %c0_i32_0 = arith.constant 0 : i32
    return %arg0, %c0_i32 : i32, i32
  }
}

</mosaic_0001>

<bundles_post_ra>
// kernel: position_wise_feed_forward.1
= control target key start
LH: loop header
LB: loop body
LE: loop exit
PB: predicated region body
PF: predicated region fallthrough
CT: control target
= control target key end

     0   :  { %14 = vsyncpa [#allocation3], 0  ;;  %s5142_s0 = inlined_call_operand.vmem [shape: bf16[512,256], index: 0, kind: input, shape index: {}]   ;;  %s5143_s1 = inlined_call_operand.vmem [shape: bf16[256,256], index: 1, kind: input, shape index: {}]   ;;  %s5144_s2 = inlined_call_operand.vmem [shape: f32[1,256], index: 2, kind: input, shape index: {}]   ;;  %s5145_s3 = inlined_call_operand.vmem [shape: bf16[256,256], index: 3, kind: input, shape index: {}]   ;;  %s5146_s4 = inlined_call_operand.vmem [shape: f32[1,256], index: 4, kind: input, shape index: {}]   ;;  %s5147_s5 = inlined_call_operand.vmem [shape: bf16[256,256], index: 5, kind: input, shape index: {}]   ;;  %s5148_s6 = inlined_call_operand.vmem [shape: f32[1,256], index: 6, kind: input, shape index: {}]   ;;  %s5149_s7 = inlined_call_operand.vmem [shape: bf16[256,256], index: 7, kind: input, shape index: {}]   ;;  %s5150_s8 = inlined_call_operand.vmem [shape: f32[1,256], index: 8, kind: input, shape index: {}]   ;;  %s5151_s9 = inlined_call_operand.hbm [shape: f32[512,256], index: 9, kind: output, shape index: {}]  }
   0x1   :  { %16 = vsyncpa [#allocation3 + $0x1], 0  ;;  %s3727_s30 = smov 0   ;;  %s3729_s10 = smov 0  }
   0x2   :  { %s3731_s11 = smov 0   ;;  %s3733_s12 = smov 0  }
   0x3 LB: > { %s3748_s13 = sadd.s32 4294967295, %s3672_s12   ;;  %s2834_s14 = sadd.s32 4294967294, %s3672_s12   ;;  %s3672_s12 = sphi %s3733_s12, %s5197_s12   ;;  %s3668_s11 = sphi %s3731_s11, %s5196_s11   ;;  %s3664_s10 = sphi %s3729_s10, %s5195_s10   ;;  %s3660_s30 = sphi %s3727_s30, %s5194_s30  }
   0x4   : > { %s3752_s15 = sadd.s32 1, %s3672_s12   ;;  %s223_s16 = sadd.s32 1, %s3668_s11 }
   0x5   : > { %s220_s17 = ssub.s32 %s3672_s12, %s3752_s15  ;;  %p233_p0 = scmp.ne.s32.totalorder %s3668_s11, %s3664_s10 }
   0x6   : > { %p221_p1 = scmp.eq.s32.totalorder %s220_s17, 0  ;;  %p234_p2 = scmp.eq.s32.totalorder %s3748_s13, 1 }
   0x7   : > { %p239_p3 = scmp.ne.s32.totalorder %s3664_s10, %s3660_s30  ;;  %p240_p4 = scmp.eq.s32.totalorder %s2834_s14, 1 }
   0x8   : > { %s3763_s18 = scalar_select %p221_p1, %s3668_s11, %s223_s16  }
   0x9   : > { %p3765_p5 = por %p234_p2, %p233_p0  ;;  %p3769_p6 = por %p240_p4, %p239_p3 }
   0xa   : > { %p2837_p7 = scmp.ge.s32.totalorder %s3672_s12, 1  ;;  %p292_p8 = scmp.lt.s32.totalorder %s3672_s12, 3 }
   0xc   : > { %p293_p9 = pnand %p2837_p7, %p292_p8 }
   0xe   : > { %296 = sbr.rel (%p293_p9) target bundleno = 872 (0x368), region = 56 }
  0x13   : > { %v3116_v0 = vld [vmem:[%s5143_s1 + $0x74] ss:$8 sps:$4 sm:$0xff]   ;;  %v3118_v1 = vld [vmem:[%s5143_s1 + $0x70] ss:$8 sps:$4 sm:$0xff]   ;;  %v3119_v2 = vld [vmem:[%s5143_s1 + $0x64] ss:$8 sps:$4 sm:$0xff]  }
  0x14   : > { %733 = vmatprep.subr.bf16.mxu0 %v3116_v0  ;;  %v3121_v3 = vld [vmem:[%s5143_s1 + $0x60] ss:$8 sps:$4 sm:$0xff]   ;;  %v3122_v4 = vld [vmem:[%s5143_s1 + $0x54] ss:$8 sps:$4 sm:$0xff]   ;;  %s2839_s16 = sshll.u32 %s3748_s13, 5  ;;  %s326_s28 = sand.u32 1, %s3664_s10  }
  0x15   : > { %734 = vmatpush1.bf16.msra.mxu0 %v3118_v1  ;;  %v3124_v5 = vld [vmem:[%s5143_s1 + $0x50] ss:$8 sps:$4 sm:$0xff]   ;;  %v3125_v6 = vld [vmem:[%s5143_s1 + $0x44] ss:$8 sps:$4 sm:$0xff]   ;;  %p330_p10 = scmp.lt.s32.totalorder %s2839_s16, 63  ;;  %s2838_s14 = sshll.u32 %s326_s28, 9 }
  0x16   : > { %735 = vmatprep.subr.bf16.mxu0 %v3119_v2  ;;  %v3127_v7 = vld [vmem:[%s5143_s1 + $0x40] ss:$8 sps:$4 sm:$0xff]   ;;  %v3128_v8 = vld [vmem:[%s5143_s1 + $0x34] ss:$8 sps:$4 sm:$0xff]   ;;  %v3130_v9 = vld [vmem:[%s5143_s1 + $0x30] ss:$8 sps:$4 sm:$0xff]  }
  0x17   : > { %s5199_s16 = smov (!%p330_p10, %s2839_s16), 63  ;;  %v3131_v10 = vld [vmem:[%s5143_s1 + $0x24] ss:$8 sps:$4 sm:$0xff]   ;;  %v3133_v11 = vld [vmem:[%s5143_s1 + $0x20] ss:$8 sps:$4 sm:$0xff]   ;;  %s4962_s17 = scalar_lea.vmem [#allocation2], %s2838_s14 }
  0x18   : > { %s3072_s21 = sshll.u32 %s5199_s16, 3  ;;  %v3134_v12 = vld [vmem:[%s5143_s1 + $0x14] ss:$8 sps:$4 sm:$0xff]   ;;  %v3136_v14 = vld [vmem:[%s5143_s1 + $0x10] ss:$8 sps:$4 sm:$0xff]   ;;  %s3674_s27 = smov [#allocation2]  }
  0x19   : > { %736 = vmatpush1.bf16.msra.mxu0 %v3121_v3  ;;  %s3815_s26 = scalar_lea.vmem %s5142_s0, %s3072_s21  ;;  %v3137_v15 = vld [vmem:[%s5143_s1 + $0x4] ss:$8 sps:$4 sm:$0xff]   ;;  %v3139_v16 = vld [vmem:[%s5143_s1] ss:$8 sps:$4 sm:$0xff]   ;;  %v3140_v17 = vld [vmem:[%s5143_s1 + $0xf4] ss:$8 sps:$4 sm:$0xff]  }
  0x1a   : > { %737 = vmatprep.subr.bf16.mxu0 %v3122_v4  ;;  %v3166_v13 = vld [vmem:[%s3815_s26 + $0x4] ss:$8 sps:$4 sm:$0xff]   ;;  %v3142_v18 = vld [vmem:[%s5143_s1 + $0xf0] ss:$8 sps:$4 sm:$0xff]   ;;  %v3145_v20 = vld [vmem:[%s5143_s1 + $0xe0] ss:$8 sps:$4 sm:$0xff]  }
  0x1b   : > { %765 = vmatprep.mubr.bf16.mxu0 %v3166_v13  ;;  %v3143_v19 = vld [vmem:[%s5143_s1 + $0xe4] ss:$8 sps:$4 sm:$0xff]   ;;  %v3146_v21 = vld [vmem:[%s5143_s1 + $0xd4] ss:$8 sps:$4 sm:$0xff]   ;;  %v3148_v22 = vld [vmem:[%s5143_s1 + $0xd0] ss:$8 sps:$4 sm:$0xff]  }
  0x1c   : > { %v3149_v23 = vld [vmem:[%s5143_s1 + $0xc4] ss:$8 sps:$4 sm:$0xff]   ;;  %v3151_v24 = vld [vmem:[%s5143_s1 + $0xc0] ss:$8 sps:$4 sm:$0xff]   ;;  %v3152_v25 = vld [vmem:[%s5143_s1 + $0xb4] ss:$8 sps:$4 sm:$0xff]  }
  0x1d   : > { %738 = vmatpush1.bf16.msra.mxu0 %v3124_v5  ;;  %v3154_v26 = vld [vmem:[%s5143_s1 + $0xb0] ss:$8 sps:$4 sm:$0xff]   ;;  %v3155_v27 = vld [vmem:[%s5143_s1 + $0xa4] ss:$8 sps:$4 sm:$0xff]   ;;  %v3157_v28 = vld [vmem:[%s5143_s1 + $0xa0] ss:$8 sps:$4 sm:$0xff]  }
  0x1e   : > { %739 = vmatprep.subr.bf16.mxu0 %v3125_v6  ;;  %v3158_v29 = vld [vmem:[%s5143_s1 + $0x94] ss:$8 sps:$4 sm:$0xff]   ;;  %v3160_v30 = vld [vmem:[%s5143_s1 + $0x90] ss:$8 sps:$4 sm:$0xff]   ;;  %v3161_v31 = vld [vmem:[%s5143_s1 + $0x84] ss:$8 sps:$4 sm:$0xff]  }
  0x1f   : > { %v3163_v32 = vld [vmem:[%s5143_s1 + $0x80] ss:$8 sps:$4 sm:$0xff]   ;;  %v3224_v33 = vld [vmem:[%s5145_s3 + $0x74] ss:$8 sps:$4 sm:$0xff]   ;;  %v3226_v34 = vld [vmem:[%s5145_s3 + $0x70] ss:$8 sps:$4 sm:$0xff]  }
  0x20   : > { %v3208_v35 = vld [vmem:[%s5147_s5 + $0x74] ss:$8 sps:$4 sm:$0xff]   ;;  %v3230_v36 = vld [vmem:[%s5145_s3 + $0x64] ss:$8 sps:$4 sm:$0xff]   ;;  %1162 = vmatprep.subr.bf16.mxu1 %v3224_v33  ;;  %v3164_v37 = vld [vmem:[%s3815_s26] ss:$8 sps:$4 sm:$0xff]  }
  0x21   : > { %740 = vmatpush1.bf16.msra.mxu0 %v3127_v7  ;;  %1163 = vmatpush1.bf16.msra.mxu1 %v3226_v34  ;;  %v3232_v38 = vld [vmem:[%s5145_s3 + $0x60] ss:$8 sps:$4 sm:$0xff]   ;;  %v3167_v39 = vld [vmem:[%s3815_s26 + $0x14] ss:$8 sps:$4 sm:$0xff]   ;;  %v3206_v40 = vld [vmem:[%s5147_s5 + $0x70] ss:$8 sps:$4 sm:$0xff]  }
  0x22   : > { %741 = vmatprep.subr.bf16.mxu0 %v3128_v8  ;;  %1164 = vmatprep.subr.bf16.mxu1 %v3230_v36  ;;  %v3214_v41 = vld [vmem:[%s5147_s5 + $0x64] ss:$8 sps:$4 sm:$0xff]   ;;  %v3233_v42 = vld [vmem:[%s5145_s3 + $0x54] ss:$8 sps:$4 sm:$0xff]   ;;  %v3235_v43 = vld [vmem:[%s5145_s3 + $0x50] ss:$8 sps:$4 sm:$0xff]  }
  0x23   : > { %v3212_v44 = vld [vmem:[%s5147_s5 + $0x60] ss:$8 sps:$4 sm:$0xff]   ;;  %v3239_v45 = vld [vmem:[%s5145_s3 + $0x44] ss:$8 sps:$4 sm:$0xff]   ;;  %v3220_v46 = vld [vmem:[%s5147_s5 + $0x54] ss:$8 sps:$4 sm:$0xff]  }
  0x24   : > { %v3169_v47 = vld [vmem:[%s3815_s26 + $0x10] ss:$8 sps:$4 sm:$0xff]   ;;  %v3241_v48 = vld [vmem:[%s5145_s3 + $0x40] ss:$8 sps:$4 sm:$0xff]   ;;  %v3170_v49 = vld [vmem:[%s3815_s26 + $0x24] ss:$8 sps:$4 sm:$0xff]  }
  0x25   : > { %742 = vmatpush1.bf16.msra.mxu0 %v3130_v9  ;;  %1165 = vmatpush1.bf16.msra.mxu1 %v3232_v38  ;;  %v3218_v50 = vld [vmem:[%s5147_s5 + $0x50] ss:$8 sps:$4 sm:$0xff]   ;;  %v3223_v51 = vld [vmem:[%s5147_s5 + $0x44] ss:$8 sps:$4 sm:$0xff]   ;;  %v3242_v52 = vld [vmem:[%s5145_s3 + $0x34] ss:$8 sps:$4 sm:$0xff]  }
  0x26   : > { %743 = vmatprep.subr.bf16.mxu0 %v3131_v10  ;;  %1166 = vmatprep.subr.bf16.mxu1 %v3233_v42  ;;  %v3221_v53 = vld [vmem:[%s5147_s5 + $0x40] ss:$8 sps:$4 sm:$0xff]   ;;  %v3244_v54 = vld [vmem:[%s5145_s3 + $0x30] ss:$8 sps:$4 sm:$0xff]   ;;  %v3248_v55 = vld [vmem:[%s5145_s3 + $0x24] ss:$8 sps:$4 sm:$0xff]  }
  0x27   : > { %v3172_v56 = vld [vmem:[%s3815_s26 + $0x20] ss:$8 sps:$4 sm:$0xff]   ;;  %v3229_v57 = vld [vmem:[%s5147_s5 + $0x34] ss:$8 sps:$4 sm:$0xff]   ;;  %v3227_v59 = vld [vmem:[%s5147_s5 + $0x30] ss:$8 sps:$4 sm:$0xff]  }
  0x28   : > { %v3173_v58 = vld [vmem:[%s3815_s26 + $0x34] ss:$8 sps:$4 sm:$0xff]   ;;  %v3250_v60 = vld [vmem:[%s5145_s3 + $0x20] ss:$8 sps:$4 sm:$0xff]   ;;  %v3238_v61 = vld [vmem:[%s5147_s5 + $0x24] ss:$8 sps:$4 sm:$0xff]  }
  0x29   : > { %744 = vmatpush1.bf16.msra.mxu0 %v3133_v11  ;;  %1167 = vmatpush1.bf16.msra.mxu1 %v3235_v43  ;;  %v3251_v62 = vld [vmem:[%s5145_s3 + $0x14] ss:$8 sps:$4 sm:$0xff]   ;;  %v3253_v63 = vld [vmem:[%s5145_s3 + $0x10] ss:$8 sps:$4 sm:$0xff]   ;;  %v3236_v0 = vld [vmem:[%s5147_s5 + $0x20] ss:$8 sps:$4 sm:$0xff]  }
  0x2a   : > { %745 = vmatprep.subr.bf16.mxu0 %v3134_v12  ;;  %1168 = vmatprep.subr.bf16.mxu1 %v3239_v45  ;;  %v3257_v1 = vld [vmem:[%s5145_s3 + $0x4] ss:$8 sps:$4 sm:$0xff]   ;;  %v3247_v2 = vld [vmem:[%s5147_s5 + $0x14] ss:$8 sps:$4 sm:$0xff]   ;;  %v3175_v3 = vld [vmem:[%s3815_s26 + $0x30] ss:$8 sps:$4 sm:$0xff]  }
  0x2b   : > { %v3259_v4 = vld [vmem:[%s5145_s3] ss:$8 sps:$4 sm:$0xff]   ;;  %v3176_v5 = vld [vmem:[%s3815_s26 + $0x44] ss:$8 sps:$4 sm:$0xff]   ;;  %v3245_v6 = vld [vmem:[%s5147_s5 + $0x10] ss:$8 sps:$4 sm:$0xff]  }
  0x2c   : > { %v3256_v7 = vld [vmem:[%s5147_s5 + $0x4] ss:$8 sps:$4 sm:$0xff]   ;;  %v3260_v8 = vld [vmem:[%s5145_s3 + $0xf4] ss:$8 sps:$4 sm:$0xff]   ;;  %v3265_v9 = vld [vmem:[%s5145_s3 + $0xf0] ss:$8 sps:$4 sm:$0xff]  }
  0x2d   : > { %746 = vmatpush1.bf16.msra.mxu0 %v3136_v14  ;;  %1169 = vmatpush1.bf16.msra.mxu1 %v3241_v48  ;;  %v3254_v10 = vld [vmem:[%s5147_s5] ss:$8 sps:$4 sm:$0xff]   ;;  %v3266_v11 = vld [vmem:[%s5145_s3 + $0xe4] ss:$8 sps:$4 sm:$0xff]   ;;  %v3264_v12 = vld [vmem:[%s5147_s5 + $0xf4] ss:$8 sps:$4 sm:$0xff]  }
  0x2e   : > { %747 = vmatprep.subr.bf16.mxu0 %v3137_v15  ;;  %1170 = vmatprep.subr.bf16.mxu1 %v3242_v52  ;;  %v3178_v13 = vld [vmem:[%s3815_s26 + $0x40] ss:$8 sps:$4 sm:$0xff]   ;;  %v3179_v15 = vld [vmem:[%s3815_s26 + $0x54] ss:$8 sps:$4 sm:$0xff]   ;;  %v3286_v34 = vld [vmem:[%s5147_s5 + $0xb0] ss:$8 sps:$4 sm:$0xff]  }
  0x2f   : > { %v3271_v14 = vld [vmem:[%s5145_s3 + $0xe0] ss:$8 sps:$4 sm:$0xff]   ;;  %v3185_v33 = vld [vmem:[%s3815_s26 + $0x74] ss:$8 sps:$4 sm:$0xff]   ;;  %v3188_v36 = vld [vmem:[%s3815_s26 + $0x84] ss:$8 sps:$4 sm:$0xff]  }
  0x30   : > { %v3191_v38 = vld [vmem:[%s3815_s26 + $0x94] ss:$8 sps:$4 sm:$0xff]   ;;  %v3295_v42 = vld [vmem:[%s5145_s3 + $0xa0] ss:$8 sps:$4 sm:$0xff]   ;;  %v3298_v45 = vld [vmem:[%s5147_s5 + $0x90] ss:$8 sps:$4 sm:$0xff]  }
  0x31   : > { %748 = vmatpush1.bf16.msra.mxu0 %v3139_v16  ;;  %1171 = vmatpush1.bf16.msra.mxu1 %v3244_v54  ;;  %v3262_v16 = vld [vmem:[%s5147_s5 + $0xf0] ss:$8 sps:$4 sm:$0xff]   ;;  %v3296_v43 = vld [vmem:[%s5145_s3 + $0x94] ss:$8 sps:$4 sm:$0xff]   ;;  %v3194_v48 = vld [vmem:[%s3815_s26 + $0xa4] ss:$8 sps:$4 sm:$0xff]  }
  0x32   : > { %749 = vmatprep.subr.bf16.mxu0 %v3140_v17  ;;  %1172 = vmatprep.subr.bf16.mxu1 %v3248_v55  ;;  %v3270_v17 = vld [vmem:[%s5147_s5 + $0xe4] ss:$8 sps:$4 sm:$0xff]   ;;  %v3307_v52 = vld [vmem:[%s5145_s3 + $0x80] ss:$8 sps:$4 sm:$0xff]   ;;  %v3197_v54 = vld [vmem:[%s3815_s26 + $0xb4] ss:$8 sps:$4 sm:$0xff]  }
  0x33   : > { %v3199_v55 = vld [vmem:[%s3815_s26 + $0xb0] ss:$8 sps:$4 sm:$0xff]   ;;  %s3074_s21 = sshll.u32 %s3748_s13, 13  ;;  %s5102_s13 = scalar_lea.sflag [#allocation3], %s326_s28 }
  0x34   : > { %s5093_s24 = scalar_lea.hbm %s5151_s9, %s3074_s21  ;;  %s3616_s29 = sshll.u32 %s3674_s27, 4  ;;  %s3617_s29 = int_to_ptr.vmem [resolvable:$false] %s3616_s29 }
  0x35   : > { %750 = vmatpush2.bf16.msra.mxu0 %v3142_v18  ;;  %1173 = vmatpush1.bf16.msra.mxu1 %v3250_v60  ;;  %v3272_v18 = vld [vmem:[%s5145_s3 + $0xd4] ss:$8 sps:$4 sm:$0xff]   ;;  %v3209_v60 = vld [vmem:[%s3815_s26 + $0xe4] ss:$8 sps:$4 sm:$0xff]   ;;  %s3618_s16 = scalar_lea.vmem %s3617_s29, 16384 }
  0x36   : > { %751 = vmatprep.subr.bf16.mxu0 %v3143_v19  ;;  %1174 = vmatprep.subr.bf16.mxu1 %v3251_v62  ;;  %v3277_v19 = vld [vmem:[%s5145_s3 + $0xd0] ss:$8 sps:$4 sm:$0xff]   ;;  %v3215_v62 = vld [vmem:[%s3815_s26 + $0xf4] ss:$8 sps:$4 sm:$0xff]  }
  0x39   : > { %752 = vmatpush2.bf16.msra.mxu0 %v3145_v20  ;;  %1175 = vmatpush1.bf16.msra.mxu1 %v3253_v63  ;;  %v3268_v20 = vld [vmem:[%s5147_s5 + $0xe0] ss:$8 sps:$4 sm:$0xff]   ;;  %v3217_v63 = vld [vmem:[%s3815_s26 + $0xf0] ss:$8 sps:$4 sm:$0xff]  }
  0x3a   : > { %753 = vmatprep.subr.bf16.mxu0 %v3146_v21  ;;  %1176 = vmatprep.subr.bf16.mxu1 %v3257_v1  ;;  %v3278_v21 = vld [vmem:[%s5145_s3 + $0xc4] ss:$8 sps:$4 sm:$0xff]   ;;  %v3310_v1 = vld [vmem:[%s5149_s7 + $0x74] ss:$8 sps:$4 sm:$0xff]  }
  0x3d   : > { %754 = vmatpush2.bf16.msra.mxu0 %v3148_v22  ;;  %1177 = vmatpush1.bf16.msra.mxu1 %v3259_v4  ;;  %v3276_v22 = vld [vmem:[%s5147_s5 + $0xd4] ss:$8 sps:$4 sm:$0xff]  }
  0x3e   : > { %755 = vmatprep.subr.bf16.mxu0 %v3149_v23  ;;  %1178 = vmatprep.subr.bf16.mxu1 %v3260_v8  ;;  %v3181_v23 = vld [vmem:[%s3815_s26 + $0x50] ss:$8 sps:$4 sm:$0xff]  }
  0x41   : > { %756 = vmatpush2.bf16.msra.mxu0 %v3151_v24  ;;  %1179 = vmatpush2.bf16.msra.mxu1 %v3265_v9  ;;  %v3283_v24 = vld [vmem:[%s5145_s3 + $0xc0] ss:$8 sps:$4 sm:$0xff]  }
  0x42   : > { %757 = vmatprep.subr.bf16.mxu0 %v3152_v25  ;;  %1180 = vmatprep.subr.bf16.mxu1 %v3266_v11  ;;  %v3182_v25 = vld [vmem:[%s3815_s26 + $0x64] ss:$8 sps:$4 sm:$0xff]  }
  0x45   : > { %758 = vmatpush2.bf16.msra.mxu0 %v3154_v26  ;;  %1181 = vmatpush2.bf16.msra.mxu1 %v3271_v14  ;;  %v3274_v26 = vld [vmem:[%s5147_s5 + $0xd0] ss:$8 sps:$4 sm:$0xff]  }
  0x46   : > { %759 = vmatprep.subr.bf16.mxu0 %v3155_v27  ;;  %1182 = vmatprep.subr.bf16.mxu1 %v3272_v18  ;;  %v3282_v27 = vld [vmem:[%s5147_s5 + $0xc4] ss:$8 sps:$4 sm:$0xff]   ;;  %v3308_v18 = vld [vmem:[%s5149_s7 + $0x70] ss:$8 sps:$4 sm:$0xff]  }
  0x49   : > { %760 = vmatpush2.bf16.msra.mxu0 %v3157_v28  ;;  %1183 = vmatpush2.bf16.msra.mxu1 %v3277_v19  ;;  %v3284_v28 = vld [vmem:[%s5145_s3 + $0xb4] ss:$8 sps:$4 sm:$0xff]  }
  0x4a   : > { %761 = vmatprep.subr.bf16.mxu0 %v3158_v29  ;;  %1184 = vmatprep.subr.bf16.mxu1 %v3278_v21  ;;  %v3289_v29 = vld [vmem:[%s5145_s3 + $0xb0] ss:$8 sps:$4 sm:$0xff]   ;;  %v3313_v21 = vld [vmem:[%s5149_s7 + $0x64] ss:$8 sps:$4 sm:$0xff]  }
  0x4d   : > { %762 = vmatpush2.bf16.msra.mxu0 %v3160_v30  ;;  %1185 = vmatpush2.bf16.msra.mxu1 %v3283_v24  ;;  %v3280_v30 = vld [vmem:[%s5147_s5 + $0xc0] ss:$8 sps:$4 sm:$0xff]  }
  0x4e   : > { %763 = vmatprep.subr.bf16.mxu0 %v3161_v31  ;;  %1186 = vmatprep.subr.bf16.mxu1 %v3284_v28  ;;  %v3288_v31 = vld [vmem:[%s5147_s5 + $0xb4] ss:$8 sps:$4 sm:$0xff]  }
  0x51   : > { %764 = vmatpush2.bf16.msra.mxu0 %v3163_v32  ;;  %v3184_v32 = vld [vmem:[%s3815_s26 + $0x60] ss:$8 sps:$4 sm:$0xff]   ;;  %1187 = vmatpush2.bf16.msra.mxu1 %v3289_v29 }
  0x52   : > { %1559 = vmatprep.subr.bf16.mxu0 %v3208_v35  ;;  %v3187_v35 = vld [vmem:[%s3815_s26 + $0x70] ss:$8 sps:$4 sm:$0xff]  }
  0x54   : > { %766 = vmatmul.mubr.bf16.vlgmr.msra.gmra.mxu0 %v3164_v37  ;;  %v3190_v37 = vld [vmem:[%s3815_s26 + $0x80] ss:$8 sps:$4 sm:$0xff]  }
  0x55   : > { %775 = vmatprep.mubr.bf16.mxu0 %v3167_v39  ;;  %1560 = vmatpush1.bf16.msra.mxu0 %v3206_v40  ;;  %v3290_v39 = vld [vmem:[%s5145_s3 + $0xa4] ss:$8 sps:$4 sm:$0xff]  }
  0x56   : > { %1561 = vmatprep.subr.bf16.mxu0 %v3214_v41  ;;  %v3294_v40 = vld [vmem:[%s5147_s5 + $0xa4] ss:$8 sps:$4 sm:$0xff]   ;;  %v3292_v41 = vld [vmem:[%s5147_s5 + $0xa0] ss:$8 sps:$4 sm:$0xff]   ;;  %1188 = vmatprep.subr.bf16.mxu1 %v3290_v39 }
  0x57   : > { %1189 = vmatpush2.bf16.msra.mxu1 %v3295_v42 }
  0x58   : > { %1190 = vmatprep.subr.bf16.mxu1 %v3296_v43 }
  0x59   : > { %1562 = vmatpush1.bf16.msra.mxu0 %v3212_v44  ;;  %v3300_v44 = vld [vmem:[%s5147_s5 + $0x94] ss:$8 sps:$4 sm:$0xff]  }
  0x5a   : > { %1563 = vmatprep.subr.bf16.mxu0 %v3220_v46  ;;  %v3301_v46 = vld [vmem:[%s5145_s3 + $0x90] ss:$8 sps:$4 sm:$0xff]  }
  0x5b   : > { %1191 = vmatpush2.bf16.msra.mxu1 %v3301_v46  ;;  %v3320_v46 = vld [vmem:[%s5149_s7 + $0x30] ss:$8 sps:$4 sm:$0xff]  }
  0x5c   : > { %776 = vmatmul.mubr.bf16.gmra.mxu0 %v3169_v47  ;;  %v3193_v47 = vld [vmem:[%s3815_s26 + $0x90] ss:$8 sps:$4 sm:$0xff]  }
  0x5d   : > { %785 = vmatprep.mubr.bf16.mxu0 %v3170_v49  ;;  %1564 = vmatpush1.bf16.msra.mxu0 %v3218_v50  ;;  %v3302_v49 = vld [vmem:[%s5145_s3 + $0x84] ss:$8 sps:$4 sm:$0xff]  }
  0x5e   : > { %1565 = vmatprep.subr.bf16.mxu0 %v3223_v51  ;;  %v3306_v50 = vld [vmem:[%s5147_s5 + $0x84] ss:$8 sps:$4 sm:$0xff]   ;;  %v3304_v51 = vld [vmem:[%s5147_s5 + $0x80] ss:$8 sps:$4 sm:$0xff]   ;;  %1192 = vmatprep.subr.bf16.mxu1 %v3302_v49 }
  0x5f   : > { %1193 = vmatpush2.bf16.msra.mxu1 %v3307_v52  ;;  %v3325_v49 = vld [vmem:[%s5149_s7 + $0x24] ss:$8 sps:$4 sm:$0xff]  }
  0x60   : > { %2500 = vmatprep.subr.bf16.mxu1 %v3310_v1  ;;  %v3329_v1 = vld [vmem:[%s5149_s7] ss:$8 sps:$4 sm:$0xff]  }
  0x61   : > { %1566 = vmatpush1.bf16.msra.mxu0 %v3221_v53  ;;  %v3196_v53 = vld [vmem:[%s3815_s26 + $0xa0] ss:$8 sps:$4 sm:$0xff]  }
  0x62   : > { %1567 = vmatprep.subr.bf16.mxu0 %v3229_v57  ;;  %v3202_v57 = vld [vmem:[%s3815_s26 + $0xc0] ss:$8 sps:$4 sm:$0xff]  }
  0x64   : > { %786 = vmatmul.mubr.bf16.gmra.mxu0 %v3172_v56  ;;  %v3200_v56 = vld [vmem:[%s3815_s26 + $0xc4] ss:$8 sps:$4 sm:$0xff]  }
  0x65   : > { %795 = vmatprep.mubr.bf16.mxu0 %v3173_v58  ;;  %1568 = vmatpush1.bf16.msra.mxu0 %v3227_v59  ;;  %v3203_v58 = vld [vmem:[%s3815_s26 + $0xd4] ss:$8 sps:$4 sm:$0xff]   ;;  %v3205_v59 = vld [vmem:[%s3815_s26 + $0xd0] ss:$8 sps:$4 sm:$0xff]  }
  0x66   : > { %1569 = vmatprep.subr.bf16.mxu0 %v3238_v61  ;;  %v3211_v61 = vld [vmem:[%s3815_s26 + $0xe0] ss:$8 sps:$4 sm:$0xff]   ;;  %s2772_s26 = sshll.u32 %s4962_s17, 4  ;;  %s5095_s26 = int_to_ptr.vmem [resolvable:$true] %s2772_s26 }
  0x67   : > { %s3612_s25 = scalar_lea.vmem %s5095_s26, 8192  ;;  %p3619_p0 = scmp.lt.s32.totalorder %s5095_s26, %s3617_s29 }
  0x68   : > { %p3613_p11 = scmp.ne.s32.totalorder %s5095_s26, %s3612_s25  ;;  %p3620_p1 = scmp.lt.s32.totalorder %s3618_s16, %s3612_s25 }
  0x69   : > { %1570 = vmatpush1.bf16.msra.mxu0 %v3236_v0  ;;  %v403_v0 = vlaneseq }
  0x6a   : > { %1571 = vmatprep.subr.bf16.mxu0 %v3247_v2  ;;  %p3614_p12 = pnand %p3613_p11, %p3765_p5  ;;  %p3621_p2 = por %p3620_p1, %p3619_p0 }
  0x6b   : > { %v404_v2 = vshrl.u32 %v403_v0, 7 }
  0x6c   : > { %796 = vmatmul.mubr.bf16.gmra.mxu0 %v3175_v3  ;;  %p3615_p13 = pneg %p3614_p12 }
  0x6d   : > { %805 = vmatprep.mubr.bf16.mxu0 %v3176_v5  ;;  %1572 = vmatpush1.bf16.msra.mxu0 %v3245_v6  ;;  %v4104_v3 = vsub.s32 1, %v404_v2  ;;  %v4106_v4 = vsub.s32 0, %v404_v2  ;;  %v401_v6 = vld [vmem:[%s5144_s2] sm:$0x3] }
  0x6e   : > { %1573 = vmatprep.subr.bf16.mxu0 %v3256_v7  ;;  %p3622_p3 = pnand %p3621_p2, %p3615_p13 }
  0x6f   : > { %5166 = vst [vmem:[#allocation5_spill] sm:$0xff] %v4104_v3  ;;  %5167 = vst [vmem:[#allocation6_spill] sm:$0xff] %v4106_v4  ;;  %v4112_v8 = vrot.slane %v401_v6, %v4104_v3  ;;  %v4115_v9 = vrot.slane %v401_v6, %v4106_v4  ;;  %v3334_v6 = vld [vmem:[%s5149_s7 + $0xf4] ss:$8 sps:$4 sm:$0xff]  }
  0x71   : > { %1574 = vmatpush1.bf16.msra.mxu0 %v3254_v10 }
  0x72   : > { %1575 = vmatprep.subr.bf16.mxu0 %v3264_v12 }
  0x74   : > { %806 = vmatmul.mubr.bf16.gmra.mxu0 %v3178_v13 }
  0x75   : > { %815 = vmatprep.mubr.bf16.mxu0 %v3179_v15  ;;  %1576 = vmatpush2.bf16.msra.mxu0 %v3262_v16 }
  0x76   : > { %1577 = vmatprep.subr.bf16.mxu0 %v3270_v17 }
  0x79   : > { %1578 = vmatpush2.bf16.msra.mxu0 %v3268_v20 }
  0x7a   : > { %1579 = vmatprep.subr.bf16.mxu0 %v3276_v22 }
  0x7c   : > { %816 = vmatmul.mubr.bf16.gmra.mxu0 %v3181_v23  ;;  %v3311_v23 = vld [vmem:[%s5149_s7 + $0x60] ss:$8 sps:$4 sm:$0xff]  }
  0x7d   : > { %825 = vmatprep.mubr.bf16.mxu0 %v3182_v25  ;;  %1580 = vmatpush2.bf16.msra.mxu0 %v3274_v26  ;;  %v3316_v26 = vld [vmem:[%s5149_s7 + $0x54] ss:$8 sps:$4 sm:$0xff]  }
  0x7e   : > { %1581 = vmatprep.subr.bf16.mxu0 %v3282_v27 }
  0x81   : > { %1582 = vmatpush2.bf16.msra.mxu0 %v3280_v30 }
  0x82   : > { %1583 = vmatprep.subr.bf16.mxu0 %v3288_v31 }
  0x84   : > { %826 = vmatmul.mubr.bf16.gmra.mxu0 %v3184_v32  ;;  %v3314_v32 = vld [vmem:[%s5149_s7 + $0x50] ss:$8 sps:$4 sm:$0xff]  }
  0x85   : > { %835 = vmatprep.mubr.bf16.mxu0 %v3185_v33  ;;  %1584 = vmatpush2.bf16.msra.mxu0 %v3286_v34 }
  0x86   : > { %1585 = vmatprep.subr.bf16.mxu0 %v3294_v40  ;;  %v3322_v40 = vld [vmem:[%s5149_s7 + $0x34] ss:$8 sps:$4 sm:$0xff]  }
  0x89   : > { %1586 = vmatpush2.bf16.msra.mxu0 %v3292_v41 }
  0x8a   : > { %1587 = vmatprep.subr.bf16.mxu0 %v3300_v44 }
  0x8c   : > { %836 = vmatmul.mubr.bf16.gmra.mxu0 %v3187_v35  ;;  %v3319_v35 = vld [vmem:[%s5149_s7 + $0x44] ss:$8 sps:$4 sm:$0xff]  }
  0x8d   : > { %845 = vmatprep.mubr.bf16.mxu0 %v3188_v36  ;;  %1588 = vmatpush2.bf16.msra.mxu0 %v3298_v45 }
  0x8e   : > { %1589 = vmatprep.subr.bf16.mxu0 %v3306_v50 }
  0x91   : > { %1590 = vmatpush2.bf16.msra.mxu0 %v3304_v51  ;;  %v3323_v51 = vld [vmem:[%s5149_s7 + $0x20] ss:$8 sps:$4 sm:$0xff]  }
  0x94   : > { %846 = vmatmul.mubr.bf16.gmra.mxu0 %v3190_v37  ;;  %v3317_v37 = vld [vmem:[%s5149_s7 + $0x40] ss:$8 sps:$4 sm:$0xff]  }
  0x95   : > { %855 = vmatprep.mubr.bf16.mxu0 %v3191_v38 }
  0x9c   : > { %856 = vmatmul.mubr.bf16.gmra.mxu0 %v3193_v47 }
  0x9d   : > { %865 = vmatprep.mubr.bf16.mxu0 %v3194_v48 }
  0xa4   : > { %866 = vmatmul.mubr.bf16.gmra.mxu0 %v3196_v53 }
  0xa5   : > { %875 = vmatprep.mubr.bf16.mxu0 %v3197_v54  ;;  %v3328_v54 = vld [vmem:[%s5149_s7 + $0x14] ss:$8 sps:$4 sm:$0xff]  }
  0xac   : > { %876 = vmatmul.mubr.bf16.gmra.mxu0 %v3199_v55 }
  0xad   : > { %885 = vmatprep.mubr.bf16.mxu0 %v3200_v56 }
  0xb4   : > { %886 = vmatmul.mubr.bf16.gmra.mxu0 %v3202_v57 }
  0xb5   : > { %895 = vmatprep.mubr.bf16.mxu0 %v3203_v58 }
  0xbc   : > { %896 = vmatmul.mubr.bf16.gmra.mxu0 %v3205_v59 }
  0xbd   : > { %905 = vmatprep.mubr.bf16.mxu0 %v3209_v60  ;;  %v3326_v60 = vld [vmem:[%s5149_s7 + $0x10] ss:$8 sps:$4 sm:$0xff]  }
  0xc4   : > { %906 = vmatmul.mubr.bf16.gmra.mxu0 %v3211_v61 }
  0xc5   : > { %915 = vmatprep.mubr.bf16.mxu0 %v3215_v62 }
  0xcc   : > { %916 = vmatmul.mubr.bf16.gmra.mxu0 %v3217_v63  ;;  %v3331_v63 = vld [vmem:[%s5149_s7 + $0x4] ss:$8 sps:$4 sm:$0xff]  }
 0x114   : > { %v767_v5 = vpop.f32.mrf.mxu0 }
 0x115   : > { %v768_v15 = vadd.f32 %v767_v5, %v4115_v9 }
 0x116   : > { %v769_v7 = vpop.f32.mrf.mxu0 }
 0x117   : > { %v770_v13 = vadd.f32 %v769_v7, %v4112_v8 }
 0x118   : > { %v771_v10 = vpop.f32.mrf.mxu0 }
 0x119   : > { %v772_v11 = vadd.f32 %v771_v10, %v4115_v9 }
 0x11a   : > { %v773_v12 = vpop.f32.mrf.mxu0 }
 0x11b   : > { %v774_v14 = vadd.f32 %v773_v12, %v4112_v8  ;;  %v926_v19 = vpack.c.bf16 %v772_v11, %v768_v15 }
 0x11c   : > { %v777_v16 = vpop.f32.mrf.mxu0 }
 0x11d   : > { %v927_v17 = vpack.c.bf16 %v774_v14, %v770_v13  ;;  %v778_v29 = vadd.f32 %v777_v16, %v4115_v9  ;;  %v3332_v14 = vld [vmem:[%s5149_s7 + $0xf0] ss:$8 sps:$4 sm:$0xff]  }
 0x11e   : > { %v779_v20 = vpop.f32.mrf.mxu0 }
 0x11f   : > { %1194 = vmatprep.mubr.bf16.mxu1 %v927_v17  ;;  %1591 = vmatprep.mubr.bf16.mxu0 %v927_v17  ;;  %v780_v27 = vadd.f32 %v779_v20, %v4112_v8  ;;  %v3337_v17 = vld [vmem:[%s5149_s7 + $0xe4] ss:$8 sps:$4 sm:$0xff]  }
 0x120   : > { %v781_v22 = vpop.f32.mrf.mxu0  ;;  %1195 = vmatmul.mubr.bf16.vlgmr.msra.gmra.mxu1 %v926_v19  ;;  %1592 = vmatmul.mubr.bf16.vlgmr.msra.gmra.mxu0 %v926_v19  ;;  %v3335_v19 = vld [vmem:[%s5149_s7 + $0xe0] ss:$8 sps:$4 sm:$0xff]  }
 0x121   : > { %2501 = vmatpush1.bf16.msra.mxu1 %v3308_v18  ;;  %v782_v24 = vadd.f32 %v781_v22, %v4115_v9  ;;  %v3340_v22 = vld [vmem:[%s5149_s7 + $0xd4] ss:$8 sps:$4 sm:$0xff]  }
 0x122   : > { %v783_v25 = vpop.f32.mrf.mxu0  ;;  %2502 = vmatprep.subr.bf16.mxu1 %v3313_v21 }
 0x123   : > { %v784_v28 = vadd.f32 %v783_v25, %v4112_v8  ;;  %v928_v33 = vpack.c.bf16 %v782_v24, %v778_v29 }
 0x124   : > { %v787_v30 = vpop.f32.mrf.mxu0 }
 0x125   : > { %v929_v31 = vpack.c.bf16 %v784_v28, %v780_v27  ;;  %2503 = vmatpush1.bf16.msra.mxu1 %v3311_v23  ;;  %v788_v43 = vadd.f32 %v787_v30, %v4115_v9  ;;  %v3338_v28 = vld [vmem:[%s5149_s7 + $0xd0] ss:$8 sps:$4 sm:$0xff]  }
 0x126   : > { %v789_v34 = vpop.f32.mrf.mxu0  ;;  %2504 = vmatprep.subr.bf16.mxu1 %v3316_v26 }
 0x127   : > { %1204 = vmatprep.mubr.bf16.mxu1 %v929_v31  ;;  %1601 = vmatprep.mubr.bf16.mxu0 %v929_v31  ;;  %v790_v41 = vadd.f32 %v789_v34, %v4112_v8 }
 0x128   : > { %v791_v36 = vpop.f32.mrf.mxu0  ;;  %1205 = vmatmul.mubr.bf16.gmra.mxu1 %v928_v33  ;;  %1602 = vmatmul.mubr.bf16.gmra.mxu0 %v928_v33 }
 0x129   : > { %2505 = vmatpush1.bf16.msra.mxu1 %v3314_v32  ;;  %v792_v38 = vadd.f32 %v791_v36, %v4115_v9 }
 0x12a   : > { %v793_v39 = vpop.f32.mrf.mxu0  ;;  %2506 = vmatprep.subr.bf16.mxu1 %v3319_v35 }
 0x12b   : > { %v794_v42 = vadd.f32 %v793_v39, %v4112_v8  ;;  %v930_v47 = vpack.c.bf16 %v792_v38, %v788_v43 }
 0x12c   : > { %v797_v44 = vpop.f32.mrf.mxu0 }
 0x12d   : > { %v931_v45 = vpack.c.bf16 %v794_v42, %v790_v41  ;;  %2507 = vmatpush1.bf16.msra.mxu1 %v3317_v37  ;;  %v798_v57 = vadd.f32 %v797_v44, %v4115_v9 }
 0x12e   : > { %v799_v48 = vpop.f32.mrf.mxu0  ;;  %2508 = vmatprep.subr.bf16.mxu1 %v3322_v40 }
 0x12f   : > { %1214 = vmatprep.mubr.bf16.mxu1 %v931_v45  ;;  %1611 = vmatprep.mubr.bf16.mxu0 %v931_v45  ;;  %v800_v55 = vadd.f32 %v799_v48, %v4112_v8 }
 0x130   : > { %v801_v50 = vpop.f32.mrf.mxu0  ;;  %1215 = vmatmul.mubr.bf16.gmra.mxu1 %v930_v47  ;;  %1612 = vmatmul.mubr.bf16.gmra.mxu0 %v930_v47 }
 0x131   : > { %2509 = vmatpush1.bf16.msra.mxu1 %v3320_v46  ;;  %v802_v52 = vadd.f32 %v801_v50, %v4115_v9 }
 0x132   : > { %v803_v53 = vpop.f32.mrf.mxu0  ;;  %2510 = vmatprep.subr.bf16.mxu1 %v3325_v49 }
 0x133   : > { %v804_v56 = vadd.f32 %v803_v53, %v4112_v8  ;;  %v932_v61 = vpack.c.bf16 %v802_v52, %v798_v57 }
 0x134   : > { %v807_v58 = vpop.f32.mrf.mxu0 }
 0x135   : > { %v933_v59 = vpack.c.bf16 %v804_v56, %v800_v55  ;;  %2511 = vmatpush1.bf16.msra.mxu1 %v3323_v51  ;;  %v808_v11 = vadd.f32 %v807_v58, %v4115_v9 }
 0x136   : > { %v809_v62 = vpop.f32.mrf.mxu0  ;;  %2512 = vmatprep.subr.bf16.mxu1 %v3328_v54 }
 0x137   : > { %1224 = vmatprep.mubr.bf16.mxu1 %v933_v59  ;;  %1621 = vmatprep.mubr.bf16.mxu0 %v933_v59  ;;  %v810_v7 = vadd.f32 %v809_v62, %v4112_v8 }
 0x138   : > { %v811_v0 = vpop.f32.mrf.mxu0  ;;  %1225 = vmatmul.mubr.bf16.gmra.mxu1 %v932_v61  ;;  %1622 = vmatmul.mubr.bf16.gmra.mxu0 %v932_v61 }
 0x139   : > { %2513 = vmatpush1.bf16.msra.mxu1 %v3326_v60  ;;  %v812_v2 = vadd.f32 %v811_v0, %v4115_v9 }
 0x13a   : > { %v813_v5 = vpop.f32.mrf.mxu0  ;;  %2514 = vmatprep.subr.bf16.mxu1 %v3331_v63 }
 0x13b   : > { %v814_v10 = vadd.f32 %v813_v5, %v4112_v8  ;;  %v934_v15 = vpack.c.bf16 %v812_v2, %v808_v11 }
 0x13c   : > { %v817_v12 = vpop.f32.mrf.mxu0 }
 0x13d   : > { %v935_v13 = vpack.c.bf16 %v814_v10, %v810_v7  ;;  %2515 = vmatpush1.bf16.msra.mxu1 %v3329_v1  ;;  %v818_v25 = vadd.f32 %v817_v12, %v4115_v9 }
 0x13e   : > { %v819_v16 = vpop.f32.mrf.mxu0  ;;  %2516 = vmatprep.subr.bf16.mxu1 %v3334_v6 }
 0x13f   : > { %1234 = vmatprep.mubr.bf16.mxu1 %v935_v13  ;;  %1631 = vmatprep.mubr.bf16.mxu0 %v935_v13  ;;  %v820_v23 = vadd.f32 %v819_v16, %v4112_v8 }
 0x140   : > { %v821_v18 = vpop.f32.mrf.mxu0  ;;  %1235 = vmatmul.mubr.bf16.gmra.mxu1 %v934_v15  ;;  %1632 = vmatmul.mubr.bf16.gmra.mxu0 %v934_v15 }
 0x141   : > { %2517 = vmatpush2.bf16.msra.mxu1 %v3332_v14  ;;  %v822_v20 = vadd.f32 %v821_v18, %v4115_v9 }
 0x142   : > { %v823_v21 = vpop.f32.mrf.mxu0  ;;  %2518 = vmatprep.subr.bf16.mxu1 %v3337_v17 }
 0x143   : > { %v824_v24 = vadd.f32 %v823_v21, %v4112_v8  ;;  %v936_v29 = vpack.c.bf16 %v822_v20, %v818_v25 }
 0x144   : > { %v827_v26 = vpop.f32.mrf.mxu0 }
 0x145   : > { %v937_v27 = vpack.c.bf16 %v824_v24, %v820_v23  ;;  %2519 = vmatpush2.bf16.msra.mxu1 %v3335_v19  ;;  %v828_v36 = vadd.f32 %v827_v26, %v4115_v9 }
 0x146   : > { %v829_v30 = vpop.f32.mrf.mxu0  ;;  %2520 = vmatprep.subr.bf16.mxu1 %v3340_v22 }
 0x147   : > { %1244 = vmatprep.mubr.bf16.mxu1 %v937_v27  ;;  %1641 = vmatprep.mubr.bf16.mxu0 %v937_v27  ;;  %v830_v34 = vadd.f32 %v829_v30, %v4112_v8 }
 0x148   : > { %v831_v31 = vpop.f32.mrf.mxu0  ;;  %1245 = vmatmul.mubr.bf16.gmra.mxu1 %v936_v29  ;;  %1642 = vmatmul.mubr.bf16.gmra.mxu0 %v936_v29 }
 0x149   : > { %2521 = vmatpush2.bf16.msra.mxu1 %v3338_v28  ;;  %v832_v32 = vadd.f32 %v831_v31, %v4115_v9 }
 0x14a   : > { %v833_v33 = vpop.f32.mrf.mxu0 }
 0x14b   : > { %v834_v35 = vadd.f32 %v833_v33, %v4112_v8  ;;  %v938_v39 = vpack.c.bf16 %v832_v32, %v828_v36 }
 0x14c   : > { %v837_v37 = vpop.f32.mrf.mxu0 }
 0x14d   : > { %v939_v38 = vpack.c.bf16 %v834_v35, %v830_v34  ;;  %v838_v46 = vadd.f32 %v837_v37, %v4115_v9  ;;  %v3343_v34 = vld [vmem:[%s5149_s7 + $0xc4] ss:$8 sps:$4 sm:$0xff]   ;;  %v3341_v37 = vld [vmem:[%s5149_s7 + $0xc0] ss:$8 sps:$4 sm:$0xff]  }
 0x14e   : > { %v839_v40 = vpop.f32.mrf.mxu0  ;;  %2522 = vmatprep.subr.bf16.mxu1 %v3343_v34 }
 0x14f   : > { %1254 = vmatprep.mubr.bf16.mxu1 %v939_v38  ;;  %1651 = vmatprep.mubr.bf16.mxu0 %v939_v38  ;;  %v840_v44 = vadd.f32 %v839_v40, %v4112_v8 }
 0x150   : > { %v841_v41 = vpop.f32.mrf.mxu0  ;;  %1255 = vmatmul.mubr.bf16.gmra.mxu1 %v938_v39  ;;  %1652 = vmatmul.mubr.bf16.gmra.mxu0 %v938_v39 }
 0x151   : > { %v842_v42 = vadd.f32 %v841_v41, %v4115_v9  ;;  %2523 = vmatpush2.bf16.msra.mxu1 %v3341_v37 }
 0x152   : > { %v843_v43 = vpop.f32.mrf.mxu0 }
 0x153   : > { %v844_v45 = vadd.f32 %v843_v43, %v4112_v8  ;;  %v940_v49 = vpack.c.bf16 %v842_v42, %v838_v46  ;;  %v3346_v43 = vld [vmem:[%s5149_s7 + $0xb4] ss:$8 sps:$4 sm:$0xff]  }
 0x154   : > { %v847_v47 = vpop.f32.mrf.mxu0  ;;  %2524 = vmatprep.subr.bf16.mxu1 %v3346_v43 }
 0x155   : > { %v941_v48 = vpack.c.bf16 %v844_v45, %v840_v44  ;;  %v848_v56 = vadd.f32 %v847_v47, %v4115_v9  ;;  %v3344_v44 = vld [vmem:[%s5149_s7 + $0xb0] ss:$8 sps:$4 sm:$0xff]  }
 0x156   : > { %v849_v50 = vpop.f32.mrf.mxu0  ;;  %2525 = vmatpush2.bf16.msra.mxu1 %v3344_v44 }
 0x157   : > { %1264 = vmatprep.mubr.bf16.mxu1 %v941_v48  ;;  %1661 = vmatprep.mubr.bf16.mxu0 %v941_v48  ;;  %v850_v54 = vadd.f32 %v849_v50, %v4112_v8  ;;  %v3349_v50 = vld [vmem:[%s5149_s7 + $0xa4] ss:$8 sps:$4 sm:$0xff]  }
 0x158   : > { %v851_v51 = vpop.f32.mrf.mxu0  ;;  %1265 = vmatmul.mubr.bf16.gmra.mxu1 %v940_v49  ;;  %1662 = vmatmul.mubr.bf16.gmra.mxu0 %v940_v49 }
 0x159   : > { %v852_v52 = vadd.f32 %v851_v51, %v4115_v9  ;;  %2526 = vmatprep.subr.bf16.mxu1 %v3349_v50 }
 0x15a   : > { %v853_v53 = vpop.f32.mrf.mxu0 }
 0x15b   : > { %v854_v55 = vadd.f32 %v853_v53, %v4112_v8  ;;  %v942_v59 = vpack.c.bf16 %v852_v52, %v848_v56  ;;  %v3347_v53 = vld [vmem:[%s5149_s7 + $0xa0] ss:$8 sps:$4 sm:$0xff]  }
 0x15c   : > { %v857_v57 = vpop.f32.mrf.mxu0  ;;  %2527 = vmatpush2.bf16.msra.mxu1 %v3347_v53 }
 0x15d   : > { %v943_v58 = vpack.c.bf16 %v854_v55, %v850_v54  ;;  %v858_v2 = vadd.f32 %v857_v57, %v4115_v9  ;;  %v3352_v57 = vld [vmem:[%s5149_s7 + $0x94] ss:$8 sps:$4 sm:$0xff]  }
 0x15e   : > { %v859_v60 = vpop.f32.mrf.mxu0  ;;  %2528 = vmatprep.subr.bf16.mxu1 %v3352_v57 }
 0x15f   : > { %1274 = vmatprep.mubr.bf16.mxu1 %v943_v58  ;;  %1671 = vmatprep.mubr.bf16.mxu0 %v943_v58  ;;  %v860_v0 = vadd.f32 %v859_v60, %v4112_v8 }
 0x160   : > { %v861_v61 = vpop.f32.mrf.mxu0  ;;  %1275 = vmatmul.mubr.bf16.gmra.mxu1 %v942_v59  ;;  %1672 = vmatmul.mubr.bf16.gmra.mxu0 %v942_v59  ;;  %v3350_v59 = vld [vmem:[%s5149_s7 + $0x90] ss:$8 sps:$4 sm:$0xff]  }
 0x161   : > { %v862_v62 = vadd.f32 %v861_v61, %v4115_v9  ;;  %2529 = vmatpush2.bf16.msra.mxu1 %v3350_v59 }
 0x162   : > { %v863_v63 = vpop.f32.mrf.mxu0 }
 0x163   : > { %v864_v1 = vadd.f32 %v863_v63, %v4112_v8  ;;  %v944_v7 = vpack.c.bf16 %v862_v62, %v858_v2  ;;  %v3355_v2 = vld [vmem:[%s5149_s7 + $0x84] ss:$8 sps:$4 sm:$0xff]  }
 0x164   : > { %v867_v5 = vpop.f32.mrf.mxu0  ;;  %2530 = vmatprep.subr.bf16.mxu1 %v3355_v2 }
 0x165   : > { %v945_v6 = vpack.c.bf16 %v864_v1, %v860_v0  ;;  %v868_v16 = vadd.f32 %v867_v5, %v4115_v9 }
 0x166   : > { %v869_v10 = vpop.f32.mrf.mxu0 }
 0x167   : > { %1284 = vmatprep.mubr.bf16.mxu1 %v945_v6  ;;  %1681 = vmatprep.mubr.bf16.mxu0 %v945_v6  ;;  %v870_v14 = vadd.f32 %v869_v10, %v4112_v8  ;;  %v3353_v6 = vld [vmem:[%s5149_s7 + $0x80] ss:$8 sps:$4 sm:$0xff]  }
 0x168   : > { %v871_v11 = vpop.f32.mrf.mxu0  ;;  %1285 = vmatmul.mubr.bf16.gmra.mxu1 %v944_v7  ;;  %1682 = vmatmul.mubr.bf16.gmra.mxu0 %v944_v7 }
 0x169   : > { %v872_v12 = vadd.f32 %v871_v11, %v4115_v9  ;;  %2531 = vmatpush2.bf16.msra.mxu1 %v3353_v6 }
 0x16a   : > { %v873_v13 = vpop.f32.mrf.mxu0 }
 0x16b   : > { %v874_v15 = vadd.f32 %v873_v13, %v4112_v8  ;;  %v946_v19 = vpack.c.bf16 %v872_v12, %v868_v16 }
 0x16c   : > { %v877_v17 = vpop.f32.mrf.mxu0 }
 0x16d   : > { %v947_v18 = vpack.c.bf16 %v874_v15, %v870_v14  ;;  %v878_v26 = vadd.f32 %v877_v17, %v4115_v9 }
 0x16e   : > { %v879_v20 = vpop.f32.mrf.mxu0 }
 0x16f   : > { %1294 = vmatprep.mubr.bf16.mxu1 %v947_v18  ;;  %1691 = vmatprep.mubr.bf16.mxu0 %v947_v18  ;;  %v880_v24 = vadd.f32 %v879_v20, %v4112_v8 }
 0x170   : > { %v881_v21 = vpop.f32.mrf.mxu0  ;;  %1295 = vmatmul.mubr.bf16.gmra.mxu1 %v946_v19  ;;  %1692 = vmatmul.mubr.bf16.gmra.mxu0 %v946_v19  ;;  %v990_v19 = vld [vmem:[%s5146_s4] sm:$0x3] }
 0x171   : > { %v882_v22 = vadd.f32 %v881_v21, %v4115_v9  ;;  %v4278_v20 = vrot.slane %v990_v19, %v4106_v4  ;;  %v4281_v21 = vrot.slane %v990_v19, %v4104_v3 }
 0x172   : > { %v883_v23 = vpop.f32.mrf.mxu0 }
 0x173   : > { %v884_v25 = vadd.f32 %v883_v23, %v4112_v8  ;;  %v948_v29 = vpack.c.bf16 %v882_v22, %v878_v26 }
 0x174   : > { %v887_v27 = vpop.f32.mrf.mxu0 }
 0x175   : > { %v949_v28 = vpack.c.bf16 %v884_v25, %v880_v24  ;;  %v888_v38 = vadd.f32 %v887_v27, %v4115_v9 }
 0x176   : > { %v889_v30 = vpop.f32.mrf.mxu0 }
 0x177   : > { %1304 = vmatprep.mubr.bf16.mxu1 %v949_v28  ;;  %1701 = vmatprep.mubr.bf16.mxu0 %v949_v28  ;;  %v890_v35 = vadd.f32 %v889_v30, %v4112_v8 }
 0x178   : > { %v891_v31 = vpop.f32.mrf.mxu0  ;;  %1305 = vmatmul.mubr.bf16.gmra.mxu1 %v948_v29  ;;  %1702 = vmatmul.mubr.bf16.gmra.mxu0 %v948_v29 }
 0x179   : > { %v892_v32 = vadd.f32 %v891_v31, %v4115_v9 }
 0x17a   : > { %v893_v33 = vpop.f32.mrf.mxu0 }
 0x17b   : > { %v894_v36 = vadd.f32 %v893_v33, %v4112_v8  ;;  %v950_v41 = vpack.c.bf16 %v892_v32, %v888_v38 }
 0x17c   : > { %v897_v39 = vpop.f32.mrf.mxu0 }
 0x17d   : > { %v951_v40 = vpack.c.bf16 %v894_v36, %v890_v35  ;;  %v898_v51 = vadd.f32 %v897_v39, %v4115_v9 }
 0x17e   : > { %v899_v42 = vpop.f32.mrf.mxu0 }
 0x17f   : > { %1314 = vmatprep.mubr.bf16.mxu1 %v951_v40  ;;  %1711 = vmatprep.mubr.bf16.mxu0 %v951_v40  ;;  %v900_v48 = vadd.f32 %v899_v42, %v4112_v8 }
 0x180   : > { %v901_v45 = vpop.f32.mrf.mxu0  ;;  %1315 = vmatmul.mubr.bf16.gmra.mxu1 %v950_v41  ;;  %1712 = vmatmul.mubr.bf16.gmra.mxu0 %v950_v41 }
 0x181   : > { %v902_v46 = vadd.f32 %v901_v45, %v4115_v9 }
 0x182   : > { %v903_v47 = vpop.f32.mrf.mxu0 }
 0x183   : > { %v904_v49 = vadd.f32 %v903_v47, %v4112_v8  ;;  %v952_v55 = vpack.c.bf16 %v902_v46, %v898_v51 }
 0x184   : > { %v907_v52 = vpop.f32.mrf.mxu0 }
 0x185   : > { %v953_v54 = vpack.c.bf16 %v904_v49, %v900_v48  ;;  %v908_v0 = vadd.f32 %v907_v52, %v4115_v9 }
 0x186   : > { %v909_v56 = vpop.f32.mrf.mxu0 }
 0x187   : > { %1324 = vmatprep.mubr.bf16.mxu1 %v953_v54  ;;  %1721 = vmatprep.mubr.bf16.mxu0 %v953_v54  ;;  %v910_v62 = vadd.f32 %v909_v56, %v4112_v8 }
 0x188   : > { %v911_v58 = vpop.f32.mrf.mxu0  ;;  %1325 = vmatmul.mubr.bf16.gmra.mxu1 %v952_v55  ;;  %1722 = vmatmul.mubr.bf16.gmra.mxu0 %v952_v55 }
 0x189   : > { %v912_v60 = vadd.f32 %v911_v58, %v4115_v9 }
 0x18a   : > { %v913_v61 = vpop.f32.mrf.mxu0 }
 0x18b   : > { %v914_v63 = vadd.f32 %v913_v61, %v4112_v8  ;;  %v954_v7 = vpack.c.bf16 %v912_v60, %v908_v0 }
 0x18c   : > { %v917_v1 = vpop.f32.mrf.mxu0 }
 0x18d   : > { %v955_v5 = vpack.c.bf16 %v914_v63, %v910_v62  ;;  %v918_v16 = vadd.f32 %v917_v1, %v4115_v9 }
 0x18e   : > { %v919_v10 = vpop.f32.mrf.mxu0 }
 0x18f   : > { %1334 = vmatprep.mubr.bf16.mxu1 %v955_v5  ;;  %1731 = vmatprep.mubr.bf16.mxu0 %v955_v5  ;;  %v920_v14 = vadd.f32 %v919_v10, %v4112_v8 }
 0x190   : > { %v921_v11 = vpop.f32.mrf.mxu0  ;;  %1335 = vmatmul.mubr.bf16.gmra.mxu1 %v954_v7  ;;  %1732 = vmatmul.mubr.bf16.gmra.mxu0 %v954_v7 }
 0x191   : > { %v922_v12 = vadd.f32 %v921_v11, %v4115_v9 }
 0x192   : > { %v923_v13 = vpop.f32.mrf.mxu0 }
 0x193   : > { %v924_v15 = vadd.f32 %v923_v13, %v4112_v8  ;;  %v956_v18 = vpack.c.bf16 %v922_v12, %v918_v16 }
 0x195   : > { %v957_v17 = vpack.c.bf16 %v924_v15, %v920_v14 }
 0x197   : > { %1344 = vmatprep.mubr.bf16.mxu1 %v957_v17  ;;  %1741 = vmatprep.mubr.bf16.mxu0 %v957_v17 }
 0x198   : > { %1345 = vmatmul.mubr.bf16.gmra.mxu1 %v956_v18  ;;  %1742 = vmatmul.mubr.bf16.gmra.mxu0 %v956_v18 }
 0x1e0   : > { %v1196_v22 = vpop.f32.mrf.mxu1  ;;  %v4283_v8 = vpop.f32.mrf.mxu0 }
 0x1e1   : > { %v4286_v9 = vadd.f32 %v1196_v22, %v4278_v20 }
 0x1e2   : > { %v1198_v23 = vpop.f32.mrf.mxu1  ;;  %v4288_v24 = vpop.f32.mrf.mxu0 }
 0x1e3   : > { %v2970_v25 = vmul.f32 -1.442695, %v4286_v9  ;;  %v4292_v26 = vadd.f32 %v1198_v23, %v4281_v21 }
 0x1e4   : > { %v1200_v27 = vpop.f32.mrf.mxu1  ;;  %v4294_v28 = vpop.f32.mrf.mxu0 }
 0x1e5   : > { %3356 = vpow2.f32 %v2970_v25  ;;  %v2971_v29 = vmul.f32 -1.442695, %v4292_v26  ;;  %v4298_v30 = vadd.f32 %v1200_v27, %v4278_v20 }
 0x1e6   : > { %v1202_v31 = vpop.f32.mrf.mxu1  ;;  %v4300_v32 = vpop.f32.mrf.mxu0 }
 0x1e7   : > { %3358 = vpow2.f32 %v2971_v29  ;;  %v2972_v33 = vmul.f32 -1.442695, %v4298_v30  ;;  %v4304_v34 = vadd.f32 %v1202_v31, %v4281_v21 }
 0x1e8   : > { %v1206_v35 = vpop.f32.mrf.mxu1  ;;  %v4306_v36 = vpop.f32.mrf.mxu0 }
 0x1e9   : > { %3360 = vpow2.f32 %v2972_v33  ;;  %v2973_v37 = vmul.f32 -1.442695, %v4304_v34  ;;  %v4310_v38 = vadd.f32 %v1206_v35, %v4278_v20 }
 0x1ea   : > { %v1208_v39 = vpop.f32.mrf.mxu1  ;;  %v4312_v40 = vpop.f32.mrf.mxu0 }
 0x1eb   : > { %3362 = vpow2.f32 %v2973_v37  ;;  %v2974_v41 = vmul.f32 -1.442695, %v4310_v38  ;;  %v4316_v42 = vadd.f32 %v1208_v39, %v4281_v21 }
 0x1ec   : > { %v1210_v43 = vpop.f32.mrf.mxu1  ;;  %v4318_v44 = vpop.f32.mrf.mxu0 }
 0x1ed   : > { %3364 = vpow2.f32 %v2974_v41  ;;  %v2975_v45 = vmul.f32 -1.442695, %v4316_v42  ;;  %v4322_v46 = vadd.f32 %v1210_v43, %v4278_v20 }
 0x1ee   : > { %v1212_v47 = vpop.f32.mrf.mxu1  ;;  %v4324_v48 = vpop.f32.mrf.mxu0 }
 0x1ef   : > { %3366 = vpow2.f32 %v2975_v45  ;;  %v2976_v49 = vmul.f32 -1.442695, %v4322_v46  ;;  %v4328_v50 = vadd.f32 %v1212_v47, %v4281_v21 }
 0x1f0   : > { %v1216_v51 = vpop.f32.mrf.mxu1  ;;  %v4330_v52 = vpop.f32.mrf.mxu0 }
 0x1f1   : > { %3368 = vpow2.f32 %v2976_v49  ;;  %v2977_v53 = vmul.f32 -1.442695, %v4328_v50  ;;  %v4334_v54 = vadd.f32 %v1216_v51, %v4278_v20  ;;  %v1387_v49 = vld [vmem:[%s5148_s6] sm:$0x3] }
 0x1f2   : > { %v3357_v55 = vpop.eup %3356  ;;  %v1218_v56 = vpop.f32.mrf.mxu1 }
 0x1f3   : > { %v4336_v57 = vpop.f32.mrf.mxu0  ;;  %v1944_v58 = vadd.f32 1.0, %v3357_v55  ;;  %3370 = vpow2.f32 %v2977_v53  ;;  %v2978_v59 = vmul.f32 -1.442695, %v4334_v54  ;;  %v4340_v60 = vadd.f32 %v1218_v56, %v4281_v21 }
 0x1f4   : > { %v3359_v61 = vpop.eup %3358  ;;  %v1220_v62 = vpop.f32.mrf.mxu1 }
 0x1f5   : > { %v4342_v63 = vpop.f32.mrf.mxu0  ;;  %3372 = vrcp.f32 %v1944_v58  ;;  %v1945_v0 = vadd.f32 1.0, %v3359_v61  ;;  %v2979_v1 = vmul.f32 -1.442695, %v4340_v60  ;;  %v4346_v2 = vadd.f32 %v1220_v62, %v4278_v20 }
 0x1f6   : > { %v3361_v5 = vpop.eup %3360  ;;  %3374 = vpow2.f32 %v2978_v59  ;;  %v1222_v6 = vpop.f32.mrf.mxu1 }
 0x1f7   : > { %v4348_v7 = vpop.f32.mrf.mxu0  ;;  %3376 = vrcp.f32 %v1945_v0  ;;  %v1946_v10 = vadd.f32 1.0, %v3361_v5  ;;  %v2980_v11 = vmul.f32 -1.442695, %v4346_v2  ;;  %v4352_v12 = vadd.f32 %v1222_v6, %v4281_v21 }
 0x1f8   : > { %v3363_v13 = vpop.eup %3362  ;;  %3378 = vpow2.f32 %v2979_v1  ;;  %v1226_v14 = vpop.f32.mrf.mxu1  ;;  %v4388_v5 = vrot.slane %v1387_v49, %v4106_v4 }
 0x1f9   : > { %v4354_v15 = vpop.f32.mrf.mxu0  ;;  %3380 = vrcp.f32 %v1946_v10  ;;  %v1947_v16 = vadd.f32 1.0, %v3363_v13  ;;  %v2981_v17 = vmul.f32 -1.442695, %v4352_v12  ;;  %v4358_v18 = vadd.f32 %v1226_v14, %v4278_v20 }
 0x1fa   : > { %v3365_v19 = vpop.eup %3364  ;;  %3382 = vpow2.f32 %v2980_v11  ;;  %v1228_v22 = vpop.f32.mrf.mxu1  ;;  %v4393_v13 = vrot.slane %v1387_v49, %v4104_v3 }
 0x1fb   : > { %v4360_v23 = vpop.f32.mrf.mxu0  ;;  %3384 = vrcp.f32 %v1947_v16  ;;  %v1948_v25 = vadd.f32 1.0, %v3365_v19  ;;  %v2982_v27 = vmul.f32 -1.442695, %v4358_v18  ;;  %v4364_v29 = vadd.f32 %v1228_v22, %v4281_v21 }
 0x1fc   : > { %v3367_v31 = vpop.eup %3366  ;;  %3386 = vpow2.f32 %v2981_v17  ;;  %v1230_v33 = vpop.f32.mrf.mxu1 }
 0x1fd   : > { %v4366_v35 = vpop.f32.mrf.mxu0  ;;  %3388 = vrcp.f32 %v1948_v25  ;;  %v1949_v37 = vadd.f32 1.0, %v3367_v31  ;;  %v2983_v39 = vmul.f32 -1.442695, %v4364_v29  ;;  %v4370_v41 = vadd.f32 %v1230_v33, %v4278_v20 }
 0x1fe   : > { %v3369_v43 = vpop.eup %3368  ;;  %3390 = vpow2.f32 %v2982_v27  ;;  %v1232_v45 = vpop.f32.mrf.mxu1 }
 0x1ff   : > { %v4372_v47 = vpop.f32.mrf.mxu0  ;;  %3392 = vrcp.f32 %v1949_v37  ;;  %v1950_v51 = vadd.f32 1.0, %v3369_v43  ;;  %v2984_v53 = vmul.f32 -1.442695, %v4370_v41  ;;  %v4379_v55 = vadd.f32 %v1232_v45, %v4281_v21 }
 0x200   : > { %v3371_v56 = vpop.eup %3370  ;;  %3394 = vpow2.f32 %v2983_v39  ;;  %v1236_v58 = vpop.f32.mrf.mxu1  ;;  %v1594_v37 = vadd.f32 %v4283_v8, %v4388_v5 }
 0x201   : > { %v4381_v59 = vpop.f32.mrf.mxu0  ;;  %3396 = vrcp.f32 %v1950_v51  ;;  %v1951_v61 = vadd.f32 1.0, %v3371_v56  ;;  %v2985_v62 = vmul.f32 -1.442695, %v4379_v55  ;;  %v4385_v0 = vadd.f32 %v1236_v58, %v4278_v20 }
 0x202   : > { %v3373_v1 = vpop.eup %3372  ;;  %3398 = vpow2.f32 %v2984_v53  ;;  %v1238_v6 = vpop.f32.mrf.mxu1  ;;  %v1596_v53 = vadd.f32 %v4288_v24, %v4393_v13  ;;  %v1598_v56 = vadd.f32 %v4294_v28, %v4388_v5 }
 0x203   : > { %5168 = vst [vmem:[#allocation7_spill] sm:$0xff] %v4385_v0  ;;  %v4390_v10 = vpop.f32.mrf.mxu0  ;;  %v3375_v11 = vpop.eup %3374  ;;  %3400 = vrcp.f32 %v1951_v61  ;;  %v2986_v14 = vmul.f32 -1.442695, %v4385_v0  ;;  %v4397_v16 = vadd.f32 %v1238_v6, %v4281_v21 }
 0x204   : > { %v3377_v17 = vpop.eup %3376  ;;  %v1952_v19 = vadd.f32 1.0, %v3375_v11  ;;  %3402 = vpow2.f32 %v2985_v62  ;;  %v1240_v22 = vpop.f32.mrf.mxu1 }
 0x205   : > { %5169 = vst [vmem:[#allocation8_spill] sm:$0xff] %v4397_v16  ;;  %v4399_v25 = vpop.f32.mrf.mxu0  ;;  %v3379_v27 = vpop.eup %3378  ;;  %3404 = vpow2.f32 %v2986_v14  ;;  %v2987_v31 = vmul.f32 -1.442695, %v4397_v16  ;;  %v4405_v43 = vadd.f32 %v1240_v22, %v4278_v20 }
 0x206   : > { %v3381_v33 = vpop.eup %3380  ;;  %v1953_v39 = vadd.f32 1.0, %v3379_v27  ;;  %v1242_v45 = vpop.f32.mrf.mxu1 }
 0x207   : > { %5170 = vst [vmem:[#allocation9_spill] sm:$0xff] %v4405_v43  ;;  %v4407_v49 = vpop.f32.mrf.mxu0  ;;  %v3383_v51 = vpop.eup %3382  ;;  %3406 = vpow2.f32 %v2987_v31  ;;  %v4414_v58 = vadd.f32 %v1242_v45, %v4281_v21  ;;  %v2138_v8 = vmul.f32 %v3381_v33, %v4298_v30  ;;  %v2988_v6 = vmul.f32 -1.442695, %v4405_v43 }
 0x208   : > { %v3385_v61 = vpop.eup %3384  ;;  %3408 = vrcp.f32 %v1952_v19  ;;  %v1954_v62 = vadd.f32 1.0, %v3383_v51  ;;  %v1246_v11 = vpop.f32.mrf.mxu1  ;;  %v1600_v30 = vadd.f32 %v4300_v32, %v4393_v13  ;;  %v4431_v19 = vadd.f32 %v4306_v36, %v4388_v5 }
 0x209   : > { %v4418_v14 = vpop.f32.mrf.mxu0  ;;  %v3387_v22 = vpop.eup %3386  ;;  %v2139_v24 = vmul.f32 %v3385_v61, %v4304_v34  ;;  %3410 = vrcp.f32 %v1953_v39  ;;  %v2989_v28 = vmul.f32 -1.442695, %v4414_v58  ;;  %v4423_v27 = vadd.f32 %v1246_v11, %v4278_v20 }
 0x20a   : > { %v4425_v31 = vpop.eup %3388  ;;  %3412 = vrcp.f32 %v1954_v62  ;;  %v1955_v33 = vadd.f32 1.0, %v3387_v22  ;;  %v1248_v45 = vpop.f32.mrf.mxu1  ;;  %v2136_v39 = vmul.f32 %v3373_v1, %v4286_v9  ;;  %v2137_v61 = vmul.f32 %v3377_v17, %v4292_v26 }
 0x20b   : > { %5171 = vst [vmem:[#allocation10_spill] sm:$0xff] %v4423_v27  ;;  %v4433_v51 = vpop.f32.mrf.mxu0  ;;  %v3391_v34 = vpop.eup %3390  ;;  %v4439_v11 = vadd.f32 %v4312_v40, %v4393_v13  ;;  %3414 = vpow2.f32 %v2988_v6  ;;  %v2990_v36 = vmul.f32 -1.442695, %v4423_v27  ;;  %v4443_v62 = vadd.f32 %v1248_v45, %v4281_v21 }
 0x20c   : > { %v3393_v32 = vpop.eup %3392  ;;  %3416 = vrcp.f32 %v1955_v33  ;;  %v1956_v3 = vadd.f32 1.0, %v3391_v34  ;;  %v1250_v22 = vpop.f32.mrf.mxu1  ;;  %v2202_v9 = vmul.f32 %v2138_v8, %v1598_v56  ;;  %v2203_v1 = vmul.f32 %v2139_v24, %v1600_v30 }
 0x20d   : > { %v4445_v4 = vpop.f32.mrf.mxu0  ;;  %v3395_v43 = vpop.eup %3394  ;;  %v1608_v26 = vadd.f32 %v4318_v44, %v4388_v5  ;;  %3418 = vpow2.f32 %v2989_v28  ;;  %v2991_v6 = vmul.f32 -1.442695, %v4443_v62  ;;  %v4451_v33 = vadd.f32 %v1250_v22, %v4278_v20 }
 0x20e   : > { %v3397_v40 = vpop.eup %3396  ;;  %3420 = vrcp.f32 %v1956_v3  ;;  %v1957_v17 = vadd.f32 1.0, %v3395_v43  ;;  %v1252_v45 = vpop.f32.mrf.mxu1  ;;  %v2200_v16 = vmul.f32 %v2136_v39, %v1594_v37  ;;  %v2201_v0 = vmul.f32 %v2137_v61, %v1596_v53 }
 0x20f   : > { %5172 = vst [vmem:[#allocation11_spill] sm:$0xff] %v4451_v33  ;;  %v4453_v34 = vpop.f32.mrf.mxu0  ;;  %v3399_v27 = vpop.eup %3398  ;;  %v1610_v56 = vadd.f32 %v4324_v48, %v4393_v13  ;;  %3422 = vpow2.f32 %v2990_v36  ;;  %v2992_v3 = vmul.f32 -1.442695, %v4451_v33  ;;  %v4459_v43 = vadd.f32 %v1252_v45, %v4281_v21 }
 0x210   : > { %v3401_v44 = vpop.eup %3400  ;;  %3424 = vrcp.f32 %v1957_v17  ;;  %v1958_v8 = vadd.f32 1.0, %v3399_v27  ;;  %v1256_v24 = vpop.f32.mrf.mxu1  ;;  %v2264_v22 = vpack.c.bf16 %v2202_v9, %v2200_v16  ;;  %v4466_v53 = vadd.f32 %v4330_v52, %v4388_v5 }
 0x211   : > { %v4461_v28 = vpop.f32.mrf.mxu0  ;;  %v3403_v30 = vpop.eup %3402  ;;  %v2143_v37 = vmul.f32 %v3401_v44, %v4328_v50  ;;  %3426 = vpow2.f32 %v2991_v6  ;;  %v2993_v39 = vmul.f32 -1.442695, %v4459_v43  ;;  %v2265_v61 = vpack.c.bf16 %v2203_v1, %v2201_v0 }
 0x212   : > { %v3405_v48 = vpop.eup %3404  ;;  %3428 = vrcp.f32 %v1958_v8  ;;  %v1959_v27 = vadd.f32 1.0, %v3403_v30  ;;  %v1258_v36 = vpop.f32.mrf.mxu1  ;;  %v2142_v45 = vmul.f32 %v3397_v40, %v4322_v46  ;;  %v4473_v50 = vadd.f32 %v1256_v24, %v4278_v20 }
 0x213   : > { %v4469_v17 = vpop.f32.mrf.mxu0  ;;  %v1960_v33 = vadd.f32 1.0, %v3405_v48  ;;  %3430 = vpow2.f32 %v2992_v3  ;;  %v2141_v52 = vmul.f32 %v3393_v32, %v4316_v42  ;;  %v4478_v9 = vadd.f32 %v4336_v57, %v4393_v13  ;;  %2532 = vmatprep.mubr.bf16.mxu1 %v2265_v61 }
 0x214   : > { %v3407_v16 = vpop.eup %3406  ;;  %3432 = vrcp.f32 %v1959_v27  ;;  %v4481_v0 = vadd.f32 %v1258_v36, %v4281_v21  ;;  %v1260_v1 = vpop.f32.mrf.mxu1  ;;  %v2140_v40 = vmul.f32 %v4425_v31, %v4310_v38  ;;  %v2994_v42 = vmul.f32 -1.442695, %v4473_v50  ;;  %2533 = vmatmul.mubr.bf16.vlgmr.msra.gmra.mxu1 %v2264_v22 }
 0x215   : > { %v4483_v6 = vpop.f32.mrf.mxu0  ;;  %v4485_v46 = vpop.eup %3408  ;;  %3434 = vrcp.f32 %v1960_v33  ;;  %v1961_v44 = vadd.f32 1.0, %v3407_v16  ;;  %v2207_v32 = vmul.f32 %v2143_v37, %v1610_v56  ;;  %v4492_v8 = vadd.f32 %v4342_v63, %v4388_v5 }
 0x216   : > { %v3411_v57 = vpop.eup %3410  ;;  %3436 = vpow2.f32 %v2993_v39  ;;  %v2995_v3 = vmul.f32 -1.442695, %v4481_v0  ;;  %v1262_v24 = vpop.f32.mrf.mxu1  ;;  %v2206_v27 = vmul.f32 %v2142_v45, %v1608_v26  ;;  %v4498_v38 = vadd.f32 %v1260_v1, %v4278_v20 }
 0x217   : > { %v4495_v30 = vpop.f32.mrf.mxu0  ;;  %v3413_v48 = vpop.eup %3412  ;;  %3438 = vrcp.f32 %v1961_v44  ;;  %v4501_v31 = vadd.f32 %v1262_v24, %v4281_v21  ;;  %v2205_v56 = vmul.f32 %v2141_v52, %v4439_v11  ;;  %v1620_v63 = vadd.f32 %v4348_v7, %v4393_v13 }
 0x218   : > { %v3415_v33 = vpop.eup %3414  ;;  %v4508_v22 = vadd.f32 %v4354_v15, %v4388_v5  ;;  %3440 = vpow2.f32 %v2994_v42  ;;  %v1266_v37 = vpop.f32.mrf.mxu1  ;;  %v2204_v61 = vmul.f32 %v2140_v40, %v4431_v19  ;;  %v2996_v45 = vmul.f32 -1.442695, %v4498_v38 }
 0x219   : > { %v4510_v26 = vpop.f32.mrf.mxu0  ;;  %v3417_v39 = vpop.eup %3416  ;;  %v1962_v36 = vadd.f32 1.0, %v3415_v33  ;;  %3442 = vpow2.f32 %v2995_v3  ;;  %v2997_v7 = vmul.f32 -1.442695, %v4501_v31  ;;  %v2267_v52 = vpack.c.bf16 %v2207_v32, %v2205_v56 }
 0x21a   : > { %v3419_v16 = vpop.eup %3418  ;;  %v2147_v11 = vmul.f32 %v3417_v39, %v4352_v12  ;;  %v4517_v15 = vadd.f32 %v1266_v37, %v4278_v20  ;;  %v1268_v1 = vpop.f32.mrf.mxu1  ;;  %v4525_v19 = vadd.f32 %v4360_v23, %v4393_v13  ;;  %v2266_v3 = vpack.c.bf16 %v2206_v27, %v2204_v61 }
 0x21b   : > { %v4519_v44 = vpop.f32.mrf.mxu0  ;;  %v4521_v42 = vpop.eup %3420  ;;  %3444 = vrcp.f32 %v1962_v36  ;;  %v1963_v40 = vadd.f32 1.0, %v3419_v16  ;;  %v2145_v12 = vmul.f32 %v3411_v57, %v4340_v60  ;;  %v4530_v32 = vadd.f32 %v4366_v35, %v4388_v5  ;;  %2542 = vmatprep.mubr.bf16.mxu1 %v2267_v52 }
 0x21c   : > { %5173 = vst [vmem:[#allocation12_spill] sm:$0xff] %v4517_v15  ;;  %v3423_v24 = vpop.eup %3422  ;;  %3446 = vpow2.f32 %v2996_v45  ;;  %v2998_v33 = vmul.f32 -1.442695, %v4517_v15  ;;  %v1270_v56 = vpop.f32.mrf.mxu1  ;;  %v1630_v23 = vadd.f32 %v4372_v47, %v4393_v13  ;;  %v4539_v27 = vadd.f32 %v4381_v59, %v4388_v5  ;;  %2543 = vmatmul.mubr.bf16.gmra.mxu1 %v2266_v3 }
 0x21d   : > { %v4533_v37 = vpop.f32.mrf.mxu0  ;;  %v3425_v39 = vpop.eup %3424  ;;  %3448 = vrcp.f32 %v1963_v40  ;;  %v4542_v60 = vadd.f32 %v1268_v1, %v4281_v21  ;;  %v2146_v57 = vmul.f32 %v3413_v48, %v4346_v2  ;;  %v2211_v61 = vmul.f32 %v2147_v11, %v1620_v63 }
 0x21e   : > { %v3427_v35 = vpop.eup %3426  ;;  %3450 = vpow2.f32 %v2997_v7  ;;  %v4546_v36 = vadd.f32 %v1270_v56, %v4278_v20  ;;  %v1272_v45 = vpop.f32.mrf.mxu1  ;;  %v4552_v59 = vadd.f32 %v4390_v10, %v4393_v13  ;;  %v4556_v52 = vadd.f32 %v4399_v25, %v4388_v5 }
 0x21f   : > { %5174 = vst [vmem:[#allocation13_spill] sm:$0xff] %v4542_v60  ;;  %v4548_v16 = vpop.f32.mrf.mxu0  ;;  %v3429_v47 = vpop.eup %3428  ;;  %v1965_v1 = vadd.f32 1.0, %v3427_v35  ;;  %v2999_v2 = vmul.f32 -1.442695, %v4542_v60  ;;  %v2144_v63 = vmul.f32 %v4485_v46, %v4334_v54  ;;  %v2209_v11 = vmul.f32 %v2145_v12, %v4478_v9 }
 0x220   : > { %5175 = vst [vmem:[#allocation14_spill] sm:$0xff] %v4546_v36  ;;  %v3431_v48 = vpop.eup %3430  ;;  %3452 = vpow2.f32 %v2998_v33  ;;  %v3000_v7 = vmul.f32 -1.442695, %v4546_v36  ;;  %v1276_v40 = vpop.f32.mrf.mxu1  ;;  %v4567_v25 = vadd.f32 %v4407_v49, %v4393_v13  ;;  %v4570_v35 = vadd.f32 %v1272_v45, %v4281_v21 }
 0x221   : > { %v4563_v3 = vpop.f32.mrf.mxu0  ;;  %v3433_v10 = vpop.eup %3432  ;;  %3454 = vrcp.f32 %v1965_v1  ;;  %v1966_v56 = vadd.f32 1.0, %v3431_v48  ;;  %v2210_v54 = vmul.f32 %v2146_v57, %v4492_v8  ;;  %v2269_v46 = vpack.c.bf16 %v2211_v61, %v2209_v11 }
 0x222   : > { %v3435_v15 = vpop.eup %3434  ;;  %v2151_v9 = vmul.f32 %v3433_v10, %v4379_v55  ;;  %3456 = vpow2.f32 %v2999_v2  ;;  %v1278_v12 = vpop.f32.mrf.mxu1  ;;  %v1964_v60 = vadd.f32 1.0, %v3423_v24  ;;  %v3001_v49 = vmul.f32 -1.442695, %v4570_v35 }
 0x223   : > { %v4574_v33 = vpop.f32.mrf.mxu0  ;;  %v3437_v36 = vpop.eup %3436  ;;  %3458 = vrcp.f32 %v1966_v56  ;;  %v4578_v1 = vadd.f32 %v1276_v40, %v4278_v20  ;;  %v2208_v48 = vmul.f32 %v2144_v63, %v4466_v53  ;;  %v2149_v8 = vmul.f32 %v3425_v39, %v4364_v29  ;;  %2552 = vmatprep.mubr.bf16.mxu1 %v2269_v46 }
 0x224   : > { %v3439_v45 = vpop.eup %3438  ;;  %v1967_v57 = vadd.f32 1.0, %v3437_v36  ;;  %3460 = vpow2.f32 %v3000_v7  ;;  %v1280_v55 = vpop.f32.mrf.mxu1  ;;  %v2148_v24 = vmul.f32 %v4521_v42, %v4358_v18  ;;  %v2150_v11 = vmul.f32 %v3429_v47, %v4370_v41 }
 0x225   : > { %5176 = vst [vmem:[#allocation15_spill] sm:$0xff] %v4578_v1  ;;  %v4582_v61 = vpop.f32.mrf.mxu0  ;;  %v3441_v2 = vpop.eup %3440  ;;  %3462 = vpow2.f32 %v3001_v49  ;;  %v3002_v40 = vmul.f32 -1.442695, %v4578_v1  ;;  %v2215_v56 = vmul.f32 %v2151_v9, %v1630_v23  ;;  %v2268_v53 = vpack.c.bf16 %v2210_v54, %v2208_v48  ;;  %v5180_v1 = vld [vmem:[#allocation9_spill] sm:$0xff] }
 0x226   : > { %v3443_v10 = vpop.eup %3442  ;;  %3464 = vrcp.f32 %v1967_v57  ;;  %v4589_v29 = vadd.f32 %v1278_v12, %v4281_v21  ;;  %v1282_v39 = vpop.f32.mrf.mxu1  ;;  %v4595_v63 = vadd.f32 %v4418_v14, %v4388_v5  ;;  %v4599_v18 = vadd.f32 %v4433_v51, %v4393_v13 }
 0x227   : > { %v4591_v36 = vpop.f32.mrf.mxu0  ;;  %3466 = vrcp.f32 %v1964_v60  ;;  %v1969_v41 = vadd.f32 1.0, %v3443_v10  ;;  %v2213_v23 = vmul.f32 %v2149_v8, %v4525_v19  ;;  %v4604_v47 = vadd.f32 %v4445_v4, %v4388_v5  ;;  %2553 = vmatmul.mubr.bf16.gmra.mxu1 %v2268_v53 }
 0x228   : > { %v3445_v42 = vpop.eup %3444  ;;  %v3003_v7 = vmul.f32 -1.442695, %v4589_v29  ;;  %v4608_v60 = vadd.f32 %v1280_v55, %v4278_v20  ;;  %v1286_v14 = vpop.f32.mrf.mxu1  ;;  %v2212_v51 = vmul.f32 %v2148_v24, %v4508_v22  ;;  %v2214_v46 = vmul.f32 %v2150_v11, %v4530_v32  ;;  %v5178_v24 = vld [vmem:[#allocation7_spill] sm:$0xff] }
 0x229   : > { %v4610_v54 = vpop.f32.mrf.mxu0  ;;  %v3447_v9 = vpop.eup %3446  ;;  %3468 = vpow2.f32 %v3002_v40  ;;  %v4615_v19 = vadd.f32 %v1282_v39, %v4281_v21  ;;  %v2271_v48 = vpack.c.bf16 %v2215_v56, %v2213_v23  ;;  %v4623_v32 = vadd.f32 %v1286_v14, %v4278_v20 }
 0x22a   : > { %5177 = vst [vmem:[#allocation16_spill] sm:$0xff] %v4608_v60  ;;  %v3449_v4 = vpop.eup %3448  ;;  %v1970_v12 = vadd.f32 1.0, %v3447_v9  ;;  %3470 = vpow2.f32 %v3003_v7  ;;  %v3004_v49 = vmul.f32 -1.442695, %v4608_v60  ;;  %v1288_v8 = vpop.f32.mrf.mxu1  ;;  %v2152_v11 = vmul.f32 %v3435_v15, %v5178_v24  ;;  %v5179_v7 = vld [vmem:[#allocation8_spill] sm:$0xff] }
 0x22b   : > { %v4618_v57 = vpop.f32.mrf.mxu0  ;;  %v3451_v55 = vpop.eup %3450  ;;  %v2155_v10 = vmul.f32 %v3449_v4, %v4414_v58  ;;  %3472 = vrcp.f32 %v1969_v41  ;;  %v3005_v22 = vmul.f32 -1.442695, %v4615_v19  ;;  %v1968_v40 = vadd.f32 1.0, %v3441_v2  ;;  %2562 = vmatprep.mubr.bf16.mxu1 %v2271_v48 }
 0x22c   : > { %3474 = vrcp.f32 %v1970_v12  ;;  %v1971_v53 = vadd.f32 1.0, %v3451_v55  ;;  %v1290_v39 = vpop.f32.mrf.mxu1  ;;  %v2153_v9 = vmul.f32 %v3439_v45, %v5179_v7  ;;  %v2154_v58 = vmul.f32 %v3445_v42, %v5180_v1 }
 0x22d   : > { %v4626_v56 = vpop.f32.mrf.mxu0  ;;  %v3453_v23 = vpop.eup %3452  ;;  %3476 = vpow2.f32 %v3004_v49  ;;  %v3006_v41 = vmul.f32 -1.442695, %v4623_v32  ;;  %v2270_v60 = vpack.c.bf16 %v2214_v46, %v2212_v51  ;;  %v4632_v15 = vadd.f32 %v1288_v8, %v4281_v21 }
 0x22e   : > { %v3455_v4 = vpop.eup %3454  ;;  %3478 = vrcp.f32 %v1971_v53  ;;  %v1972_v14 = vadd.f32 1.0, %v3453_v23  ;;  %v1292_v2 = vpop.f32.mrf.mxu1  ;;  %v2219_v55 = vmul.f32 %v2155_v10, %v4567_v25  ;;  %v1650_v45 = vadd.f32 %v4453_v34, %v4393_v13 }
 0x22f   : > { %v4634_v12 = vpop.f32.mrf.mxu0  ;;  %v3457_v48 = vpop.eup %3456  ;;  %3480 = vpow2.f32 %v3005_v22  ;;  %v4640_v1 = vadd.f32 %v1290_v39, %v4278_v20  ;;  %v4644_v51 = vadd.f32 %v4461_v28, %v4388_v5  ;;  %2563 = vmatmul.mubr.bf16.gmra.mxu1 %v2270_v60  ;;  %v3007_v49 = vmul.f32 -1.442695, %v4632_v15 }
 0x230   : > { %v3459_v42 = vpop.eup %3458  ;;  %3482 = vrcp.f32 %v1968_v40  ;;  %v1973_v46 = vadd.f32 1.0, %v3457_v48  ;;  %v1296_v8 = vpop.f32.mrf.mxu1  ;;  %v2216_v34 = vmul.f32 %v2152_v11, %v4539_v27  ;;  %v2217_v10 = vmul.f32 %v2153_v9, %v4552_v59 }
 0x231   : > { %v4647_v24 = vpop.f32.mrf.mxu0  ;;  %v3461_v25 = vpop.eup %3460  ;;  %v4653_v22 = vadd.f32 %v4469_v17, %v4393_v13  ;;  %3484 = vpow2.f32 %v3006_v41  ;;  %v2218_v28 = vmul.f32 %v2154_v58, %v4556_v52  ;;  %v3008_v60 = vmul.f32 -1.442695, %v4640_v1 }
 0x232   : > { %v3463_v40 = vpop.eup %3462  ;;  %3486 = vrcp.f32 %v1972_v14  ;;  %v4658_v53 = vadd.f32 %v1292_v2, %v4281_v21  ;;  %v1298_v39 = vpop.f32.mrf.mxu1  ;;  %v1974_v11 = vadd.f32 1.0, %v3461_v25  ;;  %v2273_v7 = vpack.c.bf16 %v2219_v55, %v2217_v10 }
 0x233   : > { %v4660_v23 = vpop.f32.mrf.mxu0  ;;  %v3465_v27 = vpop.eup %3464  ;;  %v1975_v59 = vadd.f32 1.0, %v3463_v40  ;;  %3488 = vpow2.f32 %v3007_v49  ;;  %v4665_v58 = vadd.f32 %v1296_v8, %v4278_v20  ;;  %v2157_v2 = vmul.f32 %v3455_v4, %v4443_v62  ;;  %v5182_v4 = vld [vmem:[#allocation10_spill] sm:$0xff] }
 0x234   : > { %v3467_v17 = vpop.eup %3466  ;;  %v2159_v9 = vmul.f32 %v3465_v27, %v4459_v43  ;;  %3490 = vrcp.f32 %v1973_v46  ;;  %v3009_v52 = vmul.f32 -1.442695, %v4658_v53  ;;  %v1300_v41 = vpop.f32.mrf.mxu1  ;;  %v4672_v48 = vadd.f32 %v4483_v6, %v4388_v5  ;;  %2572 = vmatprep.mubr.bf16.mxu1 %v2273_v7  ;;  %v5181_v46 = vld [vmem:[#allocation11_spill] sm:$0xff] }
 0x235   : > { %v4667_v14 = vpop.f32.mrf.mxu0  ;;  %v4676_v55 = vadd.f32 %v4495_v30, %v4393_v13  ;;  %3492 = vrcp.f32 %v1975_v59  ;;  %v2158_v49 = vmul.f32 %v3459_v42, %v5181_v46  ;;  %v3010_v8 = vmul.f32 -1.442695, %v4665_v58 }
 0x236   : > { %v3469_v43 = vpop.eup %3468  ;;  %3494 = vpow2.f32 %v3008_v60  ;;  %v2272_v25 = vpack.c.bf16 %v2218_v28, %v2216_v34  ;;  %v1302_v10 = vpop.f32.mrf.mxu1  ;;  %v2156_v6 = vmul.f32 %v3467_v17, %v5182_v4  ;;  %v2223_v27 = vmul.f32 %v2159_v9, %v1650_v45 }
 0x237   : > { %v4680_v40 = vpop.f32.mrf.mxu0  ;;  %v3471_v62 = vpop.eup %3470  ;;  %3496 = vrcp.f32 %v1974_v11  ;;  %v4684_v30 = vadd.f32 %v1298_v39, %v4281_v21  ;;  %v4688_v7 = vadd.f32 %v4510_v26, %v4388_v5  ;;  %v4691_v34 = vadd.f32 %v1300_v41, %v4278_v20 }
 0x238   : > { %v3473_v59 = vpop.eup %3472  ;;  %v1977_v42 = vadd.f32 1.0, %v3471_v62  ;;  %3498 = vpow2.f32 %v3009_v52  ;;  %2573 = vmatmul.mubr.bf16.gmra.mxu1 %v2272_v25  ;;  %v1306_v28 = vpop.f32.mrf.mxu1  ;;  %v2221_v17 = vmul.f32 %v2157_v2, %v4599_v18  ;;  %v4696_v45 = vadd.f32 %v4519_v44, %v4393_v13 }
 0x239   : > { %v3475_v60 = vpop.eup %3474  ;;  %3500 = vpow2.f32 %v3010_v8  ;;  %v3011_v39 = vmul.f32 -1.442695, %v4684_v30  ;;  %v4699_v11 = vpop.f32.mrf.mxu0  ;;  %v2222_v9 = vmul.f32 %v2158_v49, %v4604_v47  ;;  %v3012_v52 = vmul.f32 -1.442695, %v4691_v34 }
 0x23a   : > { %5183 = vst [vmem:[#allocation7_spill] sm:$0xff] %v4699_v11  ;;  %v3477_v26 = vpop.eup %3476  ;;  %3502 = vrcp.f32 %v1977_v42  ;;  %v4704_v41 = vadd.f32 %v1302_v10, %v4281_v21  ;;  %v1308_v46 = vpop.f32.mrf.mxu1  ;;  %v2220_v2 = vmul.f32 %v2156_v6, %v4595_v63  ;;  %v2275_v8 = vpack.c.bf16 %v2223_v27, %v2221_v17 }
 0x23b   : > { %v3479_v18 = vpop.eup %3478  ;;  %v1978_v44 = vadd.f32 1.0, %v3477_v26  ;;  %3504 = vpow2.f32 %v3011_v39  ;;  %v1976_v4 = vadd.f32 1.0, %v3469_v43  ;;  %v4711_v10 = vadd.f32 %v4533_v37, %v4388_v5  ;;  %v4716_v6 = vpop.f32.mrf.mxu0 }
 0x23c   : > { %v3481_v25 = vpop.eup %3480  ;;  %v2163_v62 = vmul.f32 %v3479_v18, %v4501_v31  ;;  %3506 = vpow2.f32 %v3012_v52  ;;  %v3013_v47 = vmul.f32 -1.442695, %v4704_v41  ;;  %v1310_v49 = vpop.f32.mrf.mxu1  ;;  %2582 = vmatprep.mubr.bf16.mxu1 %v2275_v8  ;;  %v4714_v63 = vadd.f32 %v1306_v28, %v4278_v20 }
 0x23d   : > { %v3483_v42 = vpop.eup %3482  ;;  %3508 = vrcp.f32 %v1978_v44  ;;  %v1979_v11 = vadd.f32 1.0, %v3481_v25  ;;  %v2161_v31 = vmul.f32 %v3473_v59, %v4481_v0  ;;  %v2162_v43 = vmul.f32 %v3475_v60, %v4498_v38 }
 0x23e   : > { %v3485_v27 = vpop.eup %3484  ;;  %3510 = vpow2.f32 %v3013_v47  ;;  %v2274_v17 = vpack.c.bf16 %v2222_v9, %v2220_v2  ;;  %v1312_v39 = vpop.f32.mrf.mxu1  ;;  %v3014_v52 = vmul.f32 -1.442695, %v4714_v63  ;;  %v4722_v18 = vadd.f32 %v1308_v46, %v4281_v21 }
 0x23f   : > { %v3487_v26 = vpop.eup %3486  ;;  %3512 = vrcp.f32 %v1979_v11  ;;  %v1980_v37 = vadd.f32 1.0, %v3485_v27  ;;  %v2227_v44 = vmul.f32 %v2163_v62, %v4676_v55  ;;  %v1670_v8 = vadd.f32 %v4548_v16, %v4393_v13  ;;  %v4732_v46 = vpop.f32.mrf.mxu0 }
 0x240   : > { %v3489_v28 = vpop.eup %3488  ;;  %3514 = vrcp.f32 %v1976_v4  ;;  %2583 = vmatmul.mubr.bf16.gmra.mxu1 %v2274_v17  ;;  %v4728_v0 = vadd.f32 %v1310_v49, %v4278_v20  ;;  %v1316_v38 = vpop.f32.mrf.mxu1  ;;  %v2160_v60 = vmul.f32 %v3483_v42, %v4473_v50  ;;  %v3015_v9 = vmul.f32 -1.442695, %v4722_v18  ;;  %5184 = vst [vmem:[#allocation8_spill] sm:$0xff] %v4732_v46 }
 0x241   : > { %v3491_v59 = vpop.eup %3490  ;;  %3516 = vrcp.f32 %v1980_v37  ;;  %v1981_v11 = vadd.f32 1.0, %v3489_v28  ;;  %v2225_v55 = vmul.f32 %v2161_v31, %v4653_v22  ;;  %v4737_v16 = vadd.f32 %v4563_v3, %v4388_v5  ;;  %v4755_v37 = vpop.f32.mrf.mxu0 }
 0x242   : > { %v3493_v2 = vpop.eup %3492  ;;  %3518 = vpow2.f32 %v3014_v52  ;;  %v3016_v25 = vmul.f32 -1.442695, %v4728_v0  ;;  %v1318_v62 = vpop.f32.mrf.mxu1  ;;  %v2226_v50 = vmul.f32 %v2162_v43, %v4672_v48  ;;  %v4743_v47 = vadd.f32 %v4574_v33, %v4393_v13  ;;  %v5185_v52 = vld [vmem:[#allocation13_spill] sm:$0xff] }
 0x243   : > { %v3495_v4 = vpop.eup %3494  ;;  %3520 = vrcp.f32 %v1981_v11  ;;  %v4746_v49 = vadd.f32 %v1312_v39, %v4281_v21  ;;  %v4750_v3 = vadd.f32 %v4582_v61, %v4388_v5  ;;  %v2277_v27 = vpack.c.bf16 %v2227_v44, %v2225_v55  ;;  %v5186_v55 = vld [vmem:[#allocation14_spill] sm:$0xff] }
 0x244   : > { %v3497_v22 = vpop.eup %3496  ;;  %v1982_v42 = vadd.f32 1.0, %v3495_v4  ;;  %3522 = vpow2.f32 %v3015_v9  ;;  %v1320_v31 = vpop.f32.mrf.mxu1  ;;  %v2224_v48 = vmul.f32 %v2160_v60, %v4644_v51  ;;  %v2167_v43 = vmul.f32 %v3493_v2, %v4570_v35 }
 0x245   : > { %v3499_v17 = vpop.eup %3498  ;;  %3524 = vpow2.f32 %v3016_v25  ;;  %v3017_v33 = vmul.f32 -1.442695, %v4746_v49  ;;  %v2165_v28 = vmul.f32 %v3491_v59, %v5185_v52  ;;  %2592 = vmatprep.mubr.bf16.mxu1 %v2277_v27  ;;  %v4759_v11 = vadd.f32 %v1316_v38, %v4278_v20  ;;  %v5187_v25 = vld [vmem:[#allocation12_spill] sm:$0xff]  ;;  %v4767_v52 = vpop.f32.mrf.mxu0 }
 0x246   : > { %v3501_v39 = vpop.eup %3500  ;;  %3526 = vrcp.f32 %v1982_v42  ;;  %v1983_v61 = vadd.f32 1.0, %v3499_v17  ;;  %v1322_v44 = vpop.f32.mrf.mxu1  ;;  %v2166_v51 = vmul.f32 %v3497_v22, %v5186_v55  ;;  %v2276_v35 = vpack.c.bf16 %v2226_v50, %v2224_v48 }
 0x247   : > { %v3503_v9 = vpop.eup %3502  ;;  %v1984_v60 = vadd.f32 1.0, %v3501_v39  ;;  %3528 = vpow2.f32 %v3017_v33  ;;  %v2164_v4 = vmul.f32 %v3487_v26, %v5187_v25  ;;  %v3018_v46 = vmul.f32 -1.442695, %v4759_v11 }
 0x248   : > { %v3505_v2 = vpop.eup %3504  ;;  %3530 = vrcp.f32 %v1983_v61  ;;  %v4765_v59 = vadd.f32 %v1318_v62, %v4281_v21  ;;  %v1326_v42 = vpop.f32.mrf.mxu1  ;;  %v2231_v38 = vmul.f32 %v2167_v43, %v1670_v8  ;;  %2593 = vmatmul.mubr.bf16.gmra.mxu1 %v2276_v35  ;;  %v4770_v22 = vadd.f32 %v1320_v31, %v4278_v20 }
 0x249   : > { %v3507_v27 = vpop.eup %3506  ;;  %3532 = vrcp.f32 %v1984_v60  ;;  %v1985_v17 = vadd.f32 1.0, %v3505_v2  ;;  %v1680_v26 = vadd.f32 %v4591_v36, %v4393_v13  ;;  %v2229_v8 = vmul.f32 %v2165_v28, %v4696_v45 }
 0x24a   : > { %v3509_v50 = vpop.eup %3508  ;;  %v1986_v48 = vadd.f32 1.0, %v3507_v27  ;;  %3534 = vpow2.f32 %v3018_v46  ;;  %v3019_v62 = vmul.f32 -1.442695, %v4765_v59  ;;  %v1328_v33 = vpop.f32.mrf.mxu1  ;;  %v2230_v43 = vmul.f32 %v2166_v51, %v4711_v10 }
 0x24b   : > { %v3511_v39 = vpop.eup %3510  ;;  %3536 = vrcp.f32 %v1985_v17  ;;  %v3020_v61 = vmul.f32 -1.442695, %v4770_v22  ;;  %v4780_v31 = vadd.f32 %v4610_v54, %v4388_v5  ;;  %v4783_v46 = vadd.f32 %v1322_v44, %v4281_v21  ;;  %v4787_v10 = vpop.f32.mrf.mxu0 }
 0x24c   : > { %v3513_v55 = vpop.eup %3512  ;;  %3538 = vrcp.f32 %v1986_v48  ;;  %v1987_v36 = vadd.f32 1.0, %v3511_v39  ;;  %v1330_v60 = vpop.f32.mrf.mxu1  ;;  %v2228_v2 = vmul.f32 %v2164_v4, %v4688_v7  ;;  %v2279_v28 = vpack.c.bf16 %v2231_v38, %v2229_v8 }
 0x24d   : > { %v3515_v35 = vpop.eup %3514  ;;  %v2171_v45 = vmul.f32 %v3513_v55, %v4615_v19  ;;  %3540 = vpow2.f32 %v3019_v62  ;;  %v4791_v54 = vadd.f32 %v4618_v57, %v4393_v13  ;;  %v3021_v25 = vmul.f32 -1.442695, %v4783_v46  ;;  %v5188_v19 = vld [vmem:[#allocation16_spill] sm:$0xff] }
 0x24e   : > { %v3517_v51 = vpop.eup %3516  ;;  %3542 = vrcp.f32 %v1987_v36  ;;  %v4795_v44 = vadd.f32 %v1326_v42, %v4278_v20  ;;  %v1332_v27 = vpop.f32.mrf.mxu1  ;;  %v2169_v7 = vmul.f32 %v3503_v9, %v4589_v29  ;;  %v2170_v4 = vmul.f32 %v3509_v50, %v5188_v19  ;;  %2602 = vmatprep.mubr.bf16.mxu1 %v2279_v28 }
 0x24f   : > { %v3519_v17 = vpop.eup %3518  ;;  %3544 = vpow2.f32 %v3020_v61  ;;  %v2278_v38 = vpack.c.bf16 %v2230_v43, %v2228_v2  ;;  %v4801_v39 = vadd.f32 %v1328_v33, %v4281_v21  ;;  %v2235_v55 = vmul.f32 %v2171_v45, %v1680_v26  ;;  %v4809_v9 = vpop.f32.mrf.mxu0  ;;  %v5189_v61 = vld [vmem:[#allocation15_spill] sm:$0xff] }
 0x250   : > { %v3521_v48 = vpop.eup %3520  ;;  %v1988_v62 = vadd.f32 1.0, %v3519_v17  ;;  %3546 = vpow2.f32 %v3021_v25  ;;  %v3022_v57 = vmul.f32 -1.442695, %v4795_v44  ;;  %v1336_v8 = vpop.f32.mrf.mxu1  ;;  %v4805_v36 = vadd.f32 %v4626_v56, %v4388_v5 }
 0x251   : > { %v3523_v42 = vpop.eup %3522  ;;  %v1690_v29 = vadd.f32 %v4634_v12, %v4393_v13  ;;  %2603 = vmatmul.mubr.bf16.gmra.mxu1 %v2278_v38  ;;  %v4812_v50 = vadd.f32 %v1330_v60, %v4278_v20  ;;  %v2168_v33 = vmul.f32 %v3515_v35, %v5189_v61  ;;  %v3023_v26 = vmul.f32 -1.442695, %v4801_v39 }
 0x252   : > { %v3525_v43 = vpop.eup %3524  ;;  %3548 = vrcp.f32 %v1988_v62  ;;  %v1989_v2 = vadd.f32 1.0, %v3523_v42  ;;  %v1338_v45 = vpop.f32.mrf.mxu1  ;;  %v2233_v56 = vmul.f32 %v2169_v7, %v4743_v47  ;;  %v4819_v12 = vadd.f32 %v4647_v24, %v4388_v5 }
 0x253   : > { %v3527_v28 = vpop.eup %3526  ;;  %v1990_v25 = vadd.f32 1.0, %v3525_v43  ;;  %3550 = vpow2.f32 %v3022_v57  ;;  %v2234_v60 = vmul.f32 %v2170_v4, %v4750_v3  ;;  %v3024_v35 = vmul.f32 -1.442695, %v4812_v50  ;;  %v4826_v47 = vpop.f32.mrf.mxu0 }
 0x254   : > { %v3529_v17 = vpop.eup %3528  ;;  %3552 = vrcp.f32 %v1989_v2  ;;  %v4824_v19 = vadd.f32 %v1332_v27, %v4281_v21  ;;  %v1340_v38 = vpop.f32.mrf.mxu1  ;;  %v2281_v7 = vpack.c.bf16 %v2235_v55, %v2233_v56  ;;  %v4829_v24 = vadd.f32 %v1336_v8, %v4278_v20 }
 0x255   : > { %v3531_v62 = vpop.eup %3530  ;;  %3554 = vrcp.f32 %v1990_v25  ;;  %v1991_v42 = vadd.f32 1.0, %v3529_v17  ;;  %v2232_v43 = vmul.f32 %v2168_v33, %v4737_v16  ;;  %v2172_v2 = vmul.f32 %v3517_v51, %v4623_v32  ;;  %v4842_v51 = vpop.f32.mrf.mxu0 }
 0x256   : > { %v3533_v57 = vpop.eup %3532  ;;  %v2175_v3 = vmul.f32 %v3531_v62, %v4658_v53  ;;  %3556 = vpow2.f32 %v3023_v26  ;;  %v3025_v4 = vmul.f32 -1.442695, %v4824_v19  ;;  %v1342_v27 = vpop.f32.mrf.mxu1  ;;  %v2173_v25 = vmul.f32 %v3521_v48, %v4632_v15  ;;  %2612 = vmatprep.mubr.bf16.mxu1 %v2281_v7 }
 0x257   : > { %v3535_v61 = vpop.eup %3534  ;;  %3558 = vrcp.f32 %v1991_v42  ;;  %v3026_v55 = vmul.f32 -1.442695, %v4829_v24  ;;  %v2174_v56 = vmul.f32 %v3527_v28, %v4640_v1  ;;  %v2280_v16 = vpack.c.bf16 %v2234_v60, %v2232_v43 }
 0x258   : > { %v3537_v8 = vpop.eup %3536  ;;  %v1992_v17 = vadd.f32 1.0, %v3535_v61  ;;  %3560 = vpow2.f32 %v3024_v35  ;;  %v1346_v53 = vpop.f32.mrf.mxu1  ;;  %v1696_v26 = vadd.f32 %v4660_v23, %v4393_v13  ;;  %v1698_v32 = vadd.f32 %v4667_v14, %v4388_v5 }
 0x259   : > { %v3539_v33 = vpop.eup %3538  ;;  %3562 = vpow2.f32 %v3025_v4  ;;  %v4845_v15 = vadd.f32 %v1338_v45, %v4281_v21  ;;  %v2239_v62 = vmul.f32 %v2175_v3, %v1690_v29  ;;  %v1700_v1 = vadd.f32 %v4680_v40, %v4393_v13  ;;  %2613 = vmatmul.mubr.bf16.gmra.mxu1 %v2280_v16  ;;  %v4861_v3 = vpop.f32.mrf.mxu0 }
 0x25a   : > { %v3541_v48 = vpop.eup %3540  ;;  %v4851_v28 = vadd.f32 %v4716_v6, %v4393_v13  ;;  %v4854_v23 = vadd.f32 %v1340_v38, %v4278_v20  ;;  %v1348_v14 = vpop.f32.mrf.mxu1  ;;  %v2236_v35 = vmul.f32 %v2172_v2, %v4780_v31  ;;  %3564 = vpow2.f32 %v3026_v55 }
 0x25b   : > { %v3543_v60 = vpop.eup %3542  ;;  %v1993_v42 = vadd.f32 1.0, %v3541_v48  ;;  %v3027_v45 = vmul.f32 -1.442695, %v4845_v15  ;;  %v2237_v7 = vmul.f32 %v2173_v25, %v4791_v54  ;;  %v2238_v40 = vmul.f32 %v2174_v56, %v4805_v36  ;;  %v4879_v48 = vpop.f32.mrf.mxu0 }
 0x25c   : > { %v3545_v29 = vpop.eup %3544  ;;  %v2176_v6 = vmul.f32 %v3533_v57, %v4665_v58  ;;  %3566 = vrcp.f32 %v1992_v17  ;;  %v3028_v4 = vmul.f32 -1.442695, %v4854_v23  ;;  %v4865_v31 = vadd.f32 %v1342_v27, %v4281_v21  ;;  %v1350_v61 = vpop.f32.mrf.mxu1 }
 0x25d   : > { %v3547_v43 = vpop.eup %3546  ;;  %3568 = vrcp.f32 %v1993_v42  ;;  %v1994_v38 = vadd.f32 1.0, %v3545_v29  ;;  %v2177_v2 = vmul.f32 %v3537_v8, %v4684_v30  ;;  %v2283_v54 = vpack.c.bf16 %v2239_v62, %v2237_v7 }
 0x25e   : > { %v1995_v55 = vadd.f32 1.0, %v3547_v43  ;;  %3570 = vpow2.f32 %v3027_v45  ;;  %v2179_v58 = vmul.f32 %v3543_v60, %v4704_v41  ;;  %v3029_v57 = vmul.f32 -1.442695, %v4865_v31  ;;  %v1352_v62 = vpop.f32.mrf.mxu1 }
 0x25f   : > { %v3549_v36 = vpop.eup %3548  ;;  %3572 = vrcp.f32 %v1994_v38  ;;  %v4871_v25 = vadd.f32 %v1346_v53, %v4278_v20  ;;  %v2178_v17 = vmul.f32 %v3539_v33, %v4691_v34  ;;  %2622 = vmatprep.mubr.bf16.mxu1 %v2283_v54  ;;  %v2282_v27 = vpack.c.bf16 %v2238_v40, %v2236_v35  ;;  %v4893_v38 = vpop.f32.mrf.mxu0 }
 0x260   : > { %v3551_v56 = vpop.eup %3550  ;;  %3574 = vrcp.f32 %v1995_v55  ;;  %v4875_v30 = vadd.f32 %v1348_v14, %v4281_v21  ;;  %v1710_v16 = vadd.f32 %v4755_v37, %v4393_v13  ;;  %v2240_v34 = vmul.f32 %v2176_v6, %v4819_v12 }
 0x261   : > { %v3553_v8 = vpop.eup %3552  ;;  %v1996_v41 = vadd.f32 1.0, %v3551_v56  ;;  %3576 = vpow2.f32 %v3028_v4  ;;  %v3030_v53 = vmul.f32 -1.442695, %v4871_v25  ;;  %2623 = vmatmul.mubr.bf16.gmra.mxu1 %v2282_v27  ;;  %v2241_v42 = vmul.f32 %v2177_v2, %v1696_v26  ;;  %v4901_v56 = vpop.f32.mrf.mxu0 }
 0x262   : > { %v3555_v60 = vpop.eup %3554  ;;  %v2181_v33 = vmul.f32 %v3553_v8, %v4722_v18  ;;  %3578 = vpow2.f32 %v3029_v57  ;;  %v3031_v14 = vmul.f32 -1.442695, %v4875_v30  ;;  %v2243_v45 = vmul.f32 %v2179_v58, %v1700_v1  ;;  %v5190_v58 = vld [vmem:[#allocation8_spill] sm:$0xff]  ;;  %v5191_v8 = vld [vmem:[#allocation7_spill] sm:$0xff] }
 0x263   : > { %v3557_v35 = vpop.eup %3556  ;;  %3580 = vrcp.f32 %v1996_v41  ;;  %v4886_v37 = vadd.f32 %v1350_v61, %v4278_v20  ;;  %v2242_v7 = vmul.f32 %v2178_v17, %v1698_v32  ;;  %v4889_v43 = vadd.f32 %v1352_v62, %v4281_v21 }
 0x264   : > { %v3559_v29 = vpop.eup %3558  ;;  %v1997_v40 = vadd.f32 1.0, %v3557_v35  ;;  %3582 = vpow2.f32 %v3030_v53  ;;  %v2182_v18 = vmul.f32 %v3555_v60, %v4728_v0  ;;  %v2245_v20 = vmul.f32 %v2181_v33, %v4851_v28  ;;  %v4906_v33 = vpop.f32.mrf.mxu0 }
 0x265   : > { %v3561_v12 = vpop.eup %3560  ;;  %v2183_v6 = vmul.f32 %v3559_v29, %v4746_v49  ;;  %3584 = vpow2.f32 %v3031_v14  ;;  %v3032_v26 = vmul.f32 -1.442695, %v4886_v37  ;;  %v3033_v4 = vmul.f32 -1.442695, %v4889_v43 }
 0x266   : > { %v3563_v1 = vpop.eup %3562  ;;  %3586 = vrcp.f32 %v1997_v40  ;;  %v1998_v32 = vadd.f32 1.0, %v3561_v12  ;;  %v2285_v2 = vpack.c.bf16 %v2243_v45, %v2241_v42  ;;  %v2284_v0 = vpack.c.bf16 %v2242_v7, %v2240_v34 }
 0x267   : > { %v2247_v61 = vmul.f32 %v2183_v6, %v1710_v16  ;;  %v1999_v21 = vadd.f32 1.0, %v3563_v1  ;;  %3588 = vpow2.f32 %v3032_v26  ;;  %v3565_v55 = vpop.eup %3564  ;;  %v2180_v54 = vmul.f32 %v3549_v36, %v4714_v63 }
 0x268   : > { %3590 = vrcp.f32 %v1998_v32  ;;  %v1708_v57 = vadd.f32 %v5190_v58, %v4388_v5  ;;  %2632 = vmatprep.mubr.bf16.mxu1 %v2285_v2  ;;  %v1704_v16 = vadd.f32 %v5191_v8, %v4388_v5  ;;  %v2000_v53 = vadd.f32 1.0, %v3565_v55 }
 0x269   : > { %v3567_v49 = vpop.eup %3566  ;;  %3592 = vrcp.f32 %v1999_v21  ;;  %v2287_v28 = vpack.c.bf16 %v2247_v61, %v2245_v20  ;;  %2633 = vmatmul.mubr.bf16.gmra.mxu1 %v2284_v0  ;;  %v1716_v35 = vadd.f32 %v4787_v10, %v4393_v13  ;;  %v1720_v45 = vadd.f32 %v4826_v47, %v4393_v13  ;;  %v1737_v20 = vpop.f32.mrf.mxu0 }
 0x26a   : > { %v3569_v17 = vpop.eup %3568  ;;  %3594 = vpow2.f32 %v3033_v4  ;;  %v2246_v41 = vmul.f32 %v2182_v18, %v1708_v57  ;;  %v2244_v34 = vmul.f32 %v2180_v54, %v1704_v16  ;;  %v1718_v47 = vadd.f32 %v4809_v9, %v4388_v5 }
 0x26b   : > { %v3571_v27 = vpop.eup %3570  ;;  %2642 = vmatprep.mubr.bf16.mxu1 %v2287_v28  ;;  %v2185_v63 = vmul.f32 %v3569_v17, %v4765_v59  ;;  %v1739_v54 = vpop.f32.mrf.mxu0  ;;  %v1726_v28 = vadd.f32 %v4861_v3, %v4393_v13 }
 0x26c   : > { %v3573_v62 = vpop.eup %3572  ;;  %v2001_v36 = vadd.f32 1.0, %v3571_v27  ;;  %v2286_v40 = vpack.c.bf16 %v2246_v41, %v2244_v34 }
 0x26d   : > { %v3575_v60 = vpop.eup %3574  ;;  %v2249_v12 = vmul.f32 %v2185_v63, %v1716_v35  ;;  %v2186_v18 = vmul.f32 %v3573_v62, %v4770_v22  ;;  %v1714_v22 = vadd.f32 %v4767_v52, %v4388_v5  ;;  %v1730_v52 = vadd.f32 %v4893_v38, %v4393_v13 }
 0x26e   : > { %v3577_v14 = vpop.eup %3576  ;;  %v2187_v42 = vmul.f32 %v3575_v60, %v4783_v46  ;;  %3596 = vrcp.f32 %v2001_v36  ;;  %v2184_v46 = vmul.f32 %v3567_v49, %v4759_v11  ;;  %v1728_v63 = vadd.f32 %v4879_v48, %v4388_v5 }
 0x26f   : > { %v3579_v29 = vpop.eup %3578  ;;  %3598 = vrcp.f32 %v2000_v53  ;;  %v2002_v7 = vadd.f32 1.0, %v3577_v14  ;;  %v2250_v2 = vmul.f32 %v2186_v18, %v1718_v47  ;;  %v1743_v53 = vpop.f32.mrf.mxu0  ;;  %v1724_v38 = vadd.f32 %v4842_v51, %v4388_v5 }
 0x270   : > { %v3581_v59 = vpop.eup %3580  ;;  %v2251_v6 = vmul.f32 %v2187_v42, %v1720_v45  ;;  %v2003_v26 = vadd.f32 1.0, %v3579_v29  ;;  %v2248_v57 = vmul.f32 %v2184_v46, %v1714_v22 }
 0x271   : > { %v3583_v1 = vpop.eup %3582  ;;  %3600 = vrcp.f32 %v2002_v7  ;;  %2643 = vmatmul.mubr.bf16.gmra.mxu1 %v2286_v40  ;;  %v2188_v62 = vmul.f32 %v3581_v59, %v4795_v44  ;;  %v1745_v60 = vpop.f32.mrf.mxu0  ;;  %v1736_v44 = vadd.f32 %v4906_v33, %v4393_v13  ;;  %v1740_v7 = vadd.f32 %v1739_v54, %v4393_v13 }
 0x272   : > { %v3585_v10 = vpop.eup %3584  ;;  %3602 = vrcp.f32 %v2003_v26  ;;  %v2289_v32 = vpack.c.bf16 %v2251_v6, %v2249_v12  ;;  %v2004_v58 = vadd.f32 1.0, %v3583_v1  ;;  %v2288_v27 = vpack.c.bf16 %v2250_v2, %v2248_v57 }
 0x273   : > { %v3587_v4 = vpop.eup %3586  ;;  %v2005_v61 = vadd.f32 1.0, %v3585_v10  ;;  %v2252_v14 = vmul.f32 %v2188_v62, %v1724_v38  ;;  %v1747_v40 = vpop.f32.mrf.mxu0  ;;  %v1738_v12 = vadd.f32 %v1737_v20, %v4388_v5  ;;  %v1734_v6 = vadd.f32 %v4901_v56, %v4388_v5 }
 0x274   : > { %v3589_v21 = vpop.eup %3588  ;;  %2652 = vmatprep.mubr.bf16.mxu1 %v2289_v32  ;;  %v2189_v0 = vmul.f32 %v3587_v4, %v4801_v39  ;;  %v1748_v22 = vadd.f32 %v1747_v40, %v4388_v5 }
 0x275   : > { %v3591_v55 = vpop.eup %3590  ;;  %v2006_v11 = vadd.f32 1.0, %v3589_v21  ;;  %3604 = vrcp.f32 %v2005_v61 }
 0x276   : > { %v3593_v49 = vpop.eup %3592  ;;  %v2190_v8 = vmul.f32 %v3591_v55, %v4812_v50  ;;  %v2253_v16 = vmul.f32 %v2189_v0, %v1726_v28 }
 0x277   : > { %v3595_v9 = vpop.eup %3594  ;;  %v2191_v17 = vmul.f32 %v3593_v49, %v4824_v19  ;;  %3606 = vrcp.f32 %v2006_v11 }
 0x278   : > { %v2007_v39 = vadd.f32 1.0, %v3595_v9  ;;  %3608 = vrcp.f32 %v2004_v58  ;;  %v2254_v50 = vmul.f32 %v2190_v8, %v1728_v63 }
 0x279   : > { %v2255_v41 = vmul.f32 %v2191_v17, %v1730_v52  ;;  %2653 = vmatmul.mubr.bf16.gmra.mxu1 %v2288_v27 }
 0x27a   : > { %3610 = vrcp.f32 %v2007_v39  ;;  %v2290_v48 = vpack.c.bf16 %v2254_v50, %v2252_v14 }
 0x27b   : > { %v3597_v19 = vpop.eup %3596  ;;  %v2291_v3 = vpack.c.bf16 %v2255_v41, %v2253_v16 }
 0x27c   : > { %v3599_v36 = vpop.eup %3598  ;;  %v2193_v35 = vmul.f32 %v3597_v19, %v4845_v15 }
 0x27d   : > { %2662 = vmatprep.mubr.bf16.mxu1 %v2291_v3  ;;  %v2192_v51 = vmul.f32 %v3599_v36, %v4829_v24  ;;  %v1746_v24 = vadd.f32 %v1745_v60, %v4393_v13 }
 0x27e   : > { %v3601_v34 = vpop.eup %3600  ;;  %v2257_v59 = vmul.f32 %v2193_v35, %v1736_v44 }
 0x27f   : > { %v3603_v42 = vpop.eup %3602  ;;  %v2194_v45 = vmul.f32 %v3601_v34, %v4854_v23  ;;  %v1749_v23 = vpop.f32.mrf.mxu0 }
 0x280   : > { %v2195_v29 = vmul.f32 %v3603_v42, %v4865_v31  ;;  %v2256_v31 = vmul.f32 %v2192_v51, %v1734_v6  ;;  %v1750_v56 = vadd.f32 %v1749_v23, %v4393_v13  ;;  %v2328_v13 = vld [vmem:[%s5150_s8] sm:$0x3] }
 0x281   : > { %2663 = vmatmul.mubr.bf16.gmra.mxu1 %v2290_v48  ;;  %v2258_v33 = vmul.f32 %v2194_v45, %v1738_v12 }
 0x282   : > { %v2259_v18 = vmul.f32 %v2195_v29, %v1740_v7  ;;  %v3605_v15 = vpop.eup %3604 }
 0x283   : > { %v2197_v46 = vmul.f32 %v3605_v15, %v4875_v30  ;;  %v2292_v32 = vpack.c.bf16 %v2258_v33, %v2256_v31  ;;  %v1744_v30 = vadd.f32 %v1743_v53, %v4388_v5 }
 0x284   : > { %v2293_v26 = vpack.c.bf16 %v2259_v18, %v2257_v59  ;;  %v3607_v1 = vpop.eup %3606 }
 0x285   : > { %v3609_v10 = vpop.eup %3608  ;;  %v2198_v20 = vmul.f32 %v3607_v1, %v4886_v37  ;;  %v2261_v21 = vmul.f32 %v2197_v46, %v1746_v24 }
 0x286   : > { %2672 = vmatprep.mubr.bf16.mxu1 %v2293_v26  ;;  %v2196_v61 = vmul.f32 %v3609_v10, %v4871_v25  ;;  %v5192_v25 = vld [vmem:[#allocation6_spill] sm:$0xff] }
 0x287   : > { %v3611_v47 = vpop.eup %3610  ;;  %v2262_v55 = vmul.f32 %v2198_v20, %v1748_v22  ;;  %v4956_v37 = vrot.slane %v2328_v13, %v5192_v25 }
 0x288   : > { %v2199_v4 = vmul.f32 %v3611_v47, %v4889_v43  ;;  %v2260_v54 = vmul.f32 %v2196_v61, %v1744_v30  ;;  %v5193_v43 = vld [vmem:[#allocation5_spill] sm:$0xff] }
 0x289   : > { %2673 = vmatmul.mubr.bf16.gmra.mxu1 %v2292_v32  ;;  %v4959_v11 = vrot.slane %v2328_v13, %v5193_v43 }
 0x28a   : > { %v2263_v2 = vmul.f32 %v2199_v4, %v1750_v56  ;;  %v2294_v58 = vpack.c.bf16 %v2262_v55, %v2260_v54 }
 0x28c   : > { %v2295_v0 = vpack.c.bf16 %v2263_v2, %v2261_v21 }
 0x28e   : > { %2682 = vmatprep.mubr.bf16.mxu1 %v2295_v0 }
 0x291   : > { %2683 = vmatmul.mubr.bf16.gmra.mxu1 %v2294_v58 }
 0x2d4   : > { %v2534_v5 = vpop.f32.mrf.mxu1 }
 0x2d5   : > { %v2535_v49 = vadd.f32 %v2534_v5, %v4956_v37 }
 0x2d6   : > { %v2536_v57 = vpop.f32.mrf.mxu1 }
 0x2d7   : > { %2693 = vst [vmem:[%s4962_s17] sm:$0xff] %v2535_v49  ;;  %v2537_v9 = vadd.f32 %v2536_v57, %v4959_v11 }
 0x2d8   : > { %v2538_v28 = vpop.f32.mrf.mxu1 }
 0x2d9   : > { %2694 = vst [vmem:[%s4962_s17 + $0x8] sm:$0xff] %v2537_v9  ;;  %v2539_v17 = vadd.f32 %v2538_v28, %v4956_v37 }
 0x2da   : > { %v2540_v52 = vpop.f32.mrf.mxu1 }
 0x2db   : > { %2695 = vst [vmem:[%s4962_s17 + $0x10] sm:$0xff] %v2539_v17  ;;  %v2541_v27 = vadd.f32 %v2540_v52, %v4959_v11 }
 0x2dc   : > { %v2544_v8 = vpop.f32.mrf.mxu1 }
 0x2dd   : > { %2696 = vst [vmem:[%s4962_s17 + $0x18] sm:$0xff] %v2541_v27  ;;  %v2545_v39 = vadd.f32 %v2544_v8, %v4956_v37 }
 0x2de   : > { %v2546_v16 = vpop.f32.mrf.mxu1 }
 0x2df   : > { %2697 = vst [vmem:[%s4962_s17 + $0x20] sm:$0xff] %v2545_v39  ;;  %v2547_v41 = vadd.f32 %v2546_v16, %v4959_v11 }
 0x2e0   : > { %v2548_v53 = vpop.f32.mrf.mxu1 }
 0x2e1   : > { %2698 = vst [vmem:[%s4962_s17 + $0x28] sm:$0xff] %v2547_v41  ;;  %v2549_v62 = vadd.f32 %v2548_v53, %v4956_v37 }
 0x2e2   : > { %v2550_v63 = vpop.f32.mrf.mxu1 }
 0x2e3   : > { %2699 = vst [vmem:[%s4962_s17 + $0x30] sm:$0xff] %v2549_v62  ;;  %v2551_v19 = vadd.f32 %v2550_v63, %v4959_v11 }
 0x2e5   : > { %2700 = vst [vmem:[%s4962_s17 + $0x38] sm:$0xff] %v2551_v19 }
 0x2e7   : > { %v2554_v3 = vpop.f32.mrf.mxu1 }
 0x2e8   : > { %v2555_v36 = vadd.f32 %v2554_v3, %v4956_v37 }
 0x2e9   : > { %v2556_v38 = vpop.f32.mrf.mxu1 }
 0x2ea   : > { %2701 = vst [vmem:[%s4962_s17 + $0x40] sm:$0xff] %v2555_v36  ;;  %v2557_v50 = vadd.f32 %v2556_v38, %v4959_v11 }
 0x2eb   : > { %v2558_v60 = vpop.f32.mrf.mxu1 }
 0x2ec   : > { %2702 = vst [vmem:[%s4962_s17 + $0x48] sm:$0xff] %v2557_v50  ;;  %v2559_v34 = vadd.f32 %v2558_v60, %v4956_v37 }
 0x2ed   : > { %v2560_v14 = vpop.f32.mrf.mxu1 }
 0x2ee   : > { %2703 = vst [vmem:[%s4962_s17 + $0x50] sm:$0xff] %v2559_v34  ;;  %v2561_v35 = vadd.f32 %v2560_v14, %v4959_v11 }
 0x2ef   : > { %v2564_v42 = vpop.f32.mrf.mxu1 }
 0x2f0   : > { %2704 = vst [vmem:[%s4962_s17 + $0x58] sm:$0xff] %v2561_v35  ;;  %v2565_v44 = vadd.f32 %v2564_v42, %v4956_v37 }
 0x2f1   : > { %v2566_v48 = vpop.f32.mrf.mxu1 }
 0x2f2   : > { %2705 = vst [vmem:[%s4962_s17 + $0x60] sm:$0xff] %v2565_v44  ;;  %v2567_v45 = vadd.f32 %v2566_v48, %v4959_v11 }
 0x2f3   : > { %v2568_v29 = vpop.f32.mrf.mxu1 }
 0x2f4   : > { %2706 = vst [vmem:[%s4962_s17 + $0x68] sm:$0xff] %v2567_v45  ;;  %v2569_v7 = vadd.f32 %v2568_v29, %v4956_v37 }
 0x2f5   : > { %v2570_v40 = vpop.f32.mrf.mxu1 }
 0x2f6   : > { %2707 = vst [vmem:[%s4962_s17 + $0x70] sm:$0xff] %v2569_v7  ;;  %v2571_v51 = vadd.f32 %v2570_v40, %v4959_v11 }
 0x2f8   : > { %v2574_v59 = vpop.f32.mrf.mxu1  ;;  %2708 = vst [vmem:[%s4962_s17 + $0x78] sm:$0xff] %v2571_v51 }
 0x2f9   : > { %v2575_v12 = vadd.f32 %v2574_v59, %v4956_v37 }
 0x2fa   : > { %v2576_v18 = vpop.f32.mrf.mxu1 }
 0x2fb   : > { %2709 = vst [vmem:[%s4962_s17 + $0x80] sm:$0xff] %v2575_v12  ;;  %v2577_v15 = vadd.f32 %v2576_v18, %v4959_v11 }
 0x2fc   : > { %v2578_v6 = vpop.f32.mrf.mxu1 }
 0x2fd   : > { %2710 = vst [vmem:[%s4962_s17 + $0x88] sm:$0xff] %v2577_v15  ;;  %v2579_v33 = vadd.f32 %v2578_v6, %v4956_v37 }
 0x2fe   : > { %v2580_v26 = vpop.f32.mrf.mxu1 }
 0x2ff   : > { %2711 = vst [vmem:[%s4962_s17 + $0x90] sm:$0xff] %v2579_v33  ;;  %v2581_v1 = vadd.f32 %v2580_v26, %v4959_v11 }
 0x300   : > { %v2584_v23 = vpop.f32.mrf.mxu1 }
 0x301   : > { %2712 = vst [vmem:[%s4962_s17 + $0x98] sm:$0xff] %v2581_v1  ;;  %v2585_v10 = vadd.f32 %v2584_v23, %v4956_v37 }
 0x302   : > { %v2586_v31 = vpop.f32.mrf.mxu1 }
 0x303   : > { %2713 = vst [vmem:[%s4962_s17 + $0xa0] sm:$0xff] %v2585_v10  ;;  %v2587_v46 = vadd.f32 %v2586_v31, %v4959_v11 }
 0x304   : > { %v2588_v47 = vpop.f32.mrf.mxu1 }
 0x305   : > { %2714 = vst [vmem:[%s4962_s17 + $0xa8] sm:$0xff] %v2587_v46  ;;  %v2589_v24 = vadd.f32 %v2588_v47, %v4956_v37 }
 0x306   : > { %v2590_v32 = vpop.f32.mrf.mxu1 }
 0x307   : > { %2715 = vst [vmem:[%s4962_s17 + $0xb0] sm:$0xff] %v2589_v24  ;;  %v2591_v20 = vadd.f32 %v2590_v32, %v4959_v11 }
 0x308   : > { %v2594_v4 = vpop.f32.mrf.mxu1 }
 0x309   : > { %2716 = vst [vmem:[%s4962_s17 + $0xb8] sm:$0xff] %v2591_v20  ;;  %v2595_v56 = vadd.f32 %v2594_v4, %v4956_v37 }
 0x30a   : > { %v2596_v61 = vpop.f32.mrf.mxu1 }
 0x30b   : > { %2717 = vst [vmem:[%s4962_s17 + $0xc0] sm:$0xff] %v2595_v56  ;;  %v2597_v21 = vadd.f32 %v2596_v61, %v4959_v11 }
 0x30c   : > { %v2598_v22 = vpop.f32.mrf.mxu1 }
 0x30d   : > { %2718 = vst [vmem:[%s4962_s17 + $0xc8] sm:$0xff] %v2597_v21  ;;  %v2599_v2 = vadd.f32 %v2598_v22, %v4956_v37 }
 0x30e   : > { %v2600_v30 = vpop.f32.mrf.mxu1 }
 0x30f   : > { %2719 = vst [vmem:[%s4962_s17 + $0xd0] sm:$0xff] %v2599_v2  ;;  %v2601_v55 = vadd.f32 %v2600_v30, %v4959_v11 }
 0x311   : > { %v2604_v0 = vpop.f32.mrf.mxu1  ;;  %2720 = vst [vmem:[%s4962_s17 + $0xd8] sm:$0xff] %v2601_v55 }
 0x312   : > { %v2605_v54 = vadd.f32 %v2604_v0, %v4956_v37 }
 0x313   : > { %v2606_v58 = vpop.f32.mrf.mxu1 }
 0x314   : > { %2721 = vst [vmem:[%s4962_s17 + $0xe0] sm:$0xff] %v2605_v54  ;;  %v2607_v13 = vadd.f32 %v2606_v58, %v4959_v11 }
 0x315   : > { %v2608_v25 = vpop.f32.mrf.mxu1 }
 0x316   : > { %2722 = vst [vmem:[%s4962_s17 + $0xe8] sm:$0xff] %v2607_v13  ;;  %v2609_v43 = vadd.f32 %v2608_v25, %v4956_v37 }
 0x317   : > { %v2610_v5 = vpop.f32.mrf.mxu1 }
 0x318   : > { %2723 = vst [vmem:[%s4962_s17 + $0xf0] sm:$0xff] %v2609_v43  ;;  %v2611_v49 = vadd.f32 %v2610_v5, %v4959_v11 }
 0x319   : > { %v2614_v57 = vpop.f32.mrf.mxu1 }
 0x31a   : > { %2724 = vst [vmem:[%s4962_s17 + $0xf8] sm:$0xff] %v2611_v49  ;;  %v2615_v9 = vadd.f32 %v2614_v57, %v4956_v37 }
 0x31b   : > { %v2616_v28 = vpop.f32.mrf.mxu1 }
 0x31c   : > { %2725 = vst [vmem:[%s4962_s17 + $0x100] sm:$0xff] %v2615_v9  ;;  %v2617_v17 = vadd.f32 %v2616_v28, %v4959_v11 }
 0x31d   : > { %v2618_v52 = vpop.f32.mrf.mxu1 }
 0x31e   : > { %2726 = vst [vmem:[%s4962_s17 + $0x108] sm:$0xff] %v2617_v17  ;;  %v2619_v27 = vadd.f32 %v2618_v52, %v4956_v37 }
 0x31f   : > { %v2620_v8 = vpop.f32.mrf.mxu1 }
 0x320   : > { %2727 = vst [vmem:[%s4962_s17 + $0x110] sm:$0xff] %v2619_v27  ;;  %v2621_v39 = vadd.f32 %v2620_v8, %v4959_v11 }
 0x321   : > { %v2624_v16 = vpop.f32.mrf.mxu1 }
 0x322   : > { %2728 = vst [vmem:[%s4962_s17 + $0x118] sm:$0xff] %v2621_v39  ;;  %v2625_v41 = vadd.f32 %v2624_v16, %v4956_v37 }
 0x323   : > { %v2626_v53 = vpop.f32.mrf.mxu1 }
 0x324   : > { %2729 = vst [vmem:[%s4962_s17 + $0x120] sm:$0xff] %v2625_v41  ;;  %v2627_v62 = vadd.f32 %v2626_v53, %v4959_v11 }
 0x325   : > { %v2628_v63 = vpop.f32.mrf.mxu1 }
 0x326   : > { %2730 = vst [vmem:[%s4962_s17 + $0x128] sm:$0xff] %v2627_v62  ;;  %v2629_v19 = vadd.f32 %v2628_v63, %v4956_v37 }
 0x327   : > { %v2630_v3 = vpop.f32.mrf.mxu1 }
 0x328   : > { %2731 = vst [vmem:[%s4962_s17 + $0x130] sm:$0xff] %v2629_v19  ;;  %v2631_v36 = vadd.f32 %v2630_v3, %v4959_v11 }
 0x329   : > { %v2634_v38 = vpop.f32.mrf.mxu1 }
 0x32a   : > { %2732 = vst [vmem:[%s4962_s17 + $0x138] sm:$0xff] %v2631_v36  ;;  %v2635_v50 = vadd.f32 %v2634_v38, %v4956_v37 }
 0x32b   : > { %v2636_v60 = vpop.f32.mrf.mxu1 }
 0x32c   : > { %2733 = vst [vmem:[%s4962_s17 + $0x140] sm:$0xff] %v2635_v50  ;;  %v2637_v34 = vadd.f32 %v2636_v60, %v4959_v11 }
 0x32d   : > { %v2638_v14 = vpop.f32.mrf.mxu1 }
 0x32e   : > { %2734 = vst [vmem:[%s4962_s17 + $0x148] sm:$0xff] %v2637_v34  ;;  %v2639_v35 = vadd.f32 %v2638_v14, %v4956_v37 }
 0x32f   : > { %v2640_v42 = vpop.f32.mrf.mxu1 }
 0x330   : > { %2735 = vst [vmem:[%s4962_s17 + $0x150] sm:$0xff] %v2639_v35  ;;  %v2641_v44 = vadd.f32 %v2640_v42, %v4959_v11 }
 0x331   : > { %v2644_v48 = vpop.f32.mrf.mxu1 }
 0x332   : > { %2736 = vst [vmem:[%s4962_s17 + $0x158] sm:$0xff] %v2641_v44  ;;  %v2645_v45 = vadd.f32 %v2644_v48, %v4956_v37 }
 0x333   : > { %v2646_v29 = vpop.f32.mrf.mxu1 }
 0x334   : > { %2737 = vst [vmem:[%s4962_s17 + $0x160] sm:$0xff] %v2645_v45  ;;  %v2647_v7 = vadd.f32 %v2646_v29, %v4959_v11 }
 0x335   : > { %v2648_v40 = vpop.f32.mrf.mxu1 }
 0x336   : > { %2738 = vst [vmem:[%s4962_s17 + $0x168] sm:$0xff] %v2647_v7  ;;  %v2649_v51 = vadd.f32 %v2648_v40, %v4956_v37 }
 0x337   : > { %v2650_v59 = vpop.f32.mrf.mxu1 }
 0x338   : > { %2739 = vst [vmem:[%s4962_s17 + $0x170] sm:$0xff] %v2649_v51  ;;  %v2651_v12 = vadd.f32 %v2650_v59, %v4959_v11 }
 0x339   : > { %v2654_v18 = vpop.f32.mrf.mxu1 }
 0x33a   : > { %2740 = vst [vmem:[%s4962_s17 + $0x178] sm:$0xff] %v2651_v12  ;;  %v2655_v15 = vadd.f32 %v2654_v18, %v4956_v37 }
 0x33b   : > { %v2656_v6 = vpop.f32.mrf.mxu1 }
 0x33c   : > { %2741 = vst [vmem:[%s4962_s17 + $0x180] sm:$0xff] %v2655_v15  ;;  %v2657_v33 = vadd.f32 %v2656_v6, %v4959_v11 }
 0x33d   : > { %v2658_v26 = vpop.f32.mrf.mxu1 }
 0x33e   : > { %2742 = vst [vmem:[%s4962_s17 + $0x188] sm:$0xff] %v2657_v33  ;;  %v2659_v1 = vadd.f32 %v2658_v26, %v4956_v37 }
 0x33f   : > { %v2660_v23 = vpop.f32.mrf.mxu1 }
 0x340   : > { %2743 = vst [vmem:[%s4962_s17 + $0x190] sm:$0xff] %v2659_v1  ;;  %v2661_v10 = vadd.f32 %v2660_v23, %v4959_v11 }
 0x341   : > { %v2664_v31 = vpop.f32.mrf.mxu1 }
 0x342   : > { %2744 = vst [vmem:[%s4962_s17 + $0x198] sm:$0xff] %v2661_v10  ;;  %v2665_v46 = vadd.f32 %v2664_v31, %v4956_v37 }
 0x343   : > { %v2666_v47 = vpop.f32.mrf.mxu1 }
 0x344   : > { %2745 = vst [vmem:[%s4962_s17 + $0x1a0] sm:$0xff] %v2665_v46  ;;  %v2667_v24 = vadd.f32 %v2666_v47, %v4959_v11 }
 0x345   : > { %v2668_v32 = vpop.f32.mrf.mxu1 }
 0x346   : > { %2746 = vst [vmem:[%s4962_s17 + $0x1a8] sm:$0xff] %v2667_v24  ;;  %v2669_v20 = vadd.f32 %v2668_v32, %v4956_v37 }
 0x347   : > { %v2670_v4 = vpop.f32.mrf.mxu1 }
 0x348   : > { %2747 = vst [vmem:[%s4962_s17 + $0x1b0] sm:$0xff] %v2669_v20  ;;  %v2671_v56 = vadd.f32 %v2670_v4, %v4959_v11 }
 0x349   : > { %v2674_v61 = vpop.f32.mrf.mxu1 }
 0x34a   : > { %2748 = vst [vmem:[%s4962_s17 + $0x1b8] sm:$0xff] %v2671_v56  ;;  %v2675_v21 = vadd.f32 %v2674_v61, %v4956_v37 }
 0x34b   : > { %v2676_v22 = vpop.f32.mrf.mxu1 }
 0x34c   : > { %2749 = vst [vmem:[%s4962_s17 + $0x1c0] sm:$0xff] %v2675_v21  ;;  %v2677_v2 = vadd.f32 %v2676_v22, %v4959_v11 }
 0x34d   : > { %v2678_v30 = vpop.f32.mrf.mxu1 }
 0x34e   : > { %2750 = vst [vmem:[%s4962_s17 + $0x1c8] sm:$0xff] %v2677_v2  ;;  %v2679_v55 = vadd.f32 %v2678_v30, %v4956_v37 }
 0x34f   : > { %v2680_v0 = vpop.f32.mrf.mxu1 }
 0x350   : > { %2751 = vst [vmem:[%s4962_s17 + $0x1d0] sm:$0xff] %v2679_v55  ;;  %v2681_v54 = vadd.f32 %v2680_v0, %v4959_v11 }
 0x351   : > { %v2684_v58 = vpop.f32.mrf.mxu1 }
 0x352   : > { %2752 = vst [vmem:[%s4962_s17 + $0x1d8] sm:$0xff] %v2681_v54  ;;  %v2685_v13 = vadd.f32 %v2684_v58, %v4956_v37 }
 0x353   : > { %v2686_v25 = vpop.f32.mrf.mxu1 }
 0x354   : > { %2753 = vst [vmem:[%s4962_s17 + $0x1e0] sm:$0xff] %v2685_v13  ;;  %v2687_v43 = vadd.f32 %v2686_v25, %v4959_v11 }
 0x355   : > { %v2688_v5 = vpop.f32.mrf.mxu1 }
 0x356   : > { %2754 = vst [vmem:[%s4962_s17 + $0x1e8] sm:$0xff] %v2687_v43  ;;  %v2689_v49 = vadd.f32 %v2688_v5, %v4956_v37 }
 0x357   : > { %v2690_v57 = vpop.f32.mrf.mxu1 }
 0x358   : > { %2755 = vst [vmem:[%s4962_s17 + $0x1f0] sm:$0xff] %v2689_v49  ;;  %v2691_v9 = vadd.f32 %v2690_v57, %v4959_v11 }
 0x35a   : > { %2756 = vst [vmem:[%s4962_s17 + $0x1f8] sm:$0xff] %v2691_v9 }
 0x35b   : > { %3625 = shalt.err (!%p3622_p3)
}
 0x35c   : > { %s3626_s28 = scalar_lea.hbm %s5093_s24, 8192  ;;  %s3630_s21 = scalar_lea.hbm %s5151_s9, 16384 }
 0x35d   : > { %p3627_p4 = scmp.ne.s32.totalorder %s5093_s24, %s3626_s28  ;;  %p3631_p9 = scmp.lt.s32.totalorder %s5093_s24, %s5151_s9 }
 0x35e   : > { %p3632_p10 = scmp.lt.s32.totalorder %s3630_s21, %s3626_s28 }
 0x35f   : > { %p3628_p7 = pnand %p3627_p4, %p3765_p5 }
 0x360   : > { %p3633_p11 = por %p3632_p10, %p3631_p9 }
 0x361   : > { %p3629_p8 = pneg %p3628_p7 }
 0x363   : > { %p3634_p12 = pnand %p3633_p11, %p3629_p8 }
 0x365   : > { %3637 = shalt.err (!%p3634_p12)
}
 0x366   : > { %s3675_s25 = smov 256   ;;  %s3676_s27 = smov 16  }
 0x367   : > { %3075 = dma.vmem_to_hbm [thread:$0]  (%p3765_p5), %s5095_s26, 8192, %s5093_s24, %s5102_s13, %s3675_s25, %s3675_s25, %s3676_s27  }
 0x368 PF: > { %p3081_p13 = scmp.ge.s32.totalorder %s3672_s12, 2  ;;  %s2787_s29 = sand.u32 1, %s3660_s30  }
 0x369   : > { %s2788_s16 = scalar_lea.sflag [#allocation3], %s2787_s29 }
 0x36a   : > { %p3078_p0 = pnand %p3081_p13, %p3769_p6 }
 0x36c   : > { %p3079_p1 = pneg %p3078_p0 }
 0x36e   : > { %3655 = dma.done.wait (%p3079_p1), %s2788_s16, 8192  }
 0x36f   : > { %3657 = vsyncadd (%p3079_p1), %s2788_s16, 4294959104  ;;  %p19_p2 = scmp.ge.s32.totalorder %s3752_s15, 4   ;;  %s5194_s30 = smov %s3664_s10 }
 0x370   : > { %s5195_s10 = smov %s3668_s11  ;;  %s5196_s11 = smov %s3763_s18 }
 0x371   : > { %s5197_s12 = smov %s3752_s15  ;;  %21 = sbr.rel (!%p19_p2) target bundleno = 3 (0x3), region = 91 }
 0x376   :  { %2793 = vsyncpa [#allocation3], 1 }
 0x377   :  { %2795 = vsyncpa [#allocation3 + $0x1], 1 }

</bundles_post_ra>
